<compile_context>
chip_gen: v7x
topology: tpu7x:2x2x1
jax: 0.10.0
libtpu: 0.0.40
codegen_flags: <defaults>
</compile_context>

<pallas_src>
import functools

import jax
import jax.numpy as jnp
from jax.experimental import pallas as pl
from jax.experimental.pallas import tpu as pltpu

D_EMB = 1280
H1, H2, H3, H4 = 320, 80, 20, 2


def _round_up(x, m):
    return (x + m - 1) // m * m


def _pick_batch_tile(B, tb):
    """Largest divisor of B that is <= tb; prefer >=2 batch tiles (megacore)."""
    tb_eff = max(1, min(tb, B))
    while B % tb_eff:
        tb_eff -= 1
    if B // tb_eff < 2 and B >= 2:
        tb_eff = max(d for d in range(1, B // 2 + 1) if B % d == 0)
    return tb_eff


def _head_kernel(x_ref, m_ref, cnt_ref,
                 w1_ref, b1_ref, w2_ref, b2_ref,
                 w3_ref, b3_ref, w4_ref, b4_ref,
                 pooled_ref, h1_ref, h2_ref, h3_ref, out_ref,
                 acc_ref):
    l = pl.program_id(1)

    @pl.when(l == 0)
    def _init():
        acc_ref[...] = jnp.zeros_like(acc_ref)

    # Hot loop: masked-sum pooling on the MXU.
    #   mask [tb,1,tl] (bf16) @ reps [tb,tl,D] (bf16) -> [tb,1,D], f32 acc.
    acc_ref[...] += jnp.einsum(
        'bql,bld->bqd', m_ref[...], x_ref[...],
        preferred_element_type=jnp.float32)

    # Finalize once per batch tile: exact mean + fc chain (off the hot loop).
    @pl.when(l == pl.num_programs(1) - 1)
    def _finalize():
        pooled3 = acc_ref[...] / cnt_ref[...]          # [tb,1,D] exact divide
        pooled_ref[...] = pooled3
        pooled = pooled3[:, 0, :]                      # [tb, D]

        h1 = jnp.maximum(
            jnp.dot(pooled.astype(jnp.bfloat16), w1_ref[...],
                    preferred_element_type=jnp.float32) + b1_ref[...], 0.0)
        h1_ref[...] = h1[:, None, :]

        h2 = jnp.maximum(
            jnp.dot(h1.astype(jnp.bfloat16), w2_ref[...],
                    preferred_element_type=jnp.float32) + b2_ref[...], 0.0)
        h2_ref[...] = h2[:, None, :]

        h3 = jnp.maximum(
            jnp.dot(h2.astype(jnp.bfloat16), w3_ref[...],
                    preferred_element_type=jnp.float32) + b3_ref[...], 0.0)
        h3_ref[...] = h3[:, None, :]

        out = (jnp.dot(h3.astype(jnp.bfloat16), w4_ref[...],
                       preferred_element_type=jnp.float32) + b4_ref[...])
        out_ref[...] = out[:, None, :]


@functools.partial(jax.jit, static_argnames=("tb", "tl"))
def model_binary_head(tokens, reps, params, *, tb=8, tl=512):
    """tokens: [B, L] int32; reps: [B, L, 1280] ESM layer-33 representations.

    tb/tl tuning: tl=512 (default) is at/near the HBM roofline on v5e/v6e;
    on v7x prefer tl=512-1024 with tb chosen so nb >= 2 (both TensorCores).
    """
    B, L = tokens.shape
    w1, b1, w2, b2, w3, b3, w4, b4 = params

    # --- tiling (no batch padding; seq padding only when L % tl != 0) -------
    tb_eff = _pick_batch_tile(B, tb)
    if L <= tl:
        tl_eff, l_pad = L, L                 # full-seq block: no (8,128) issue
    else:
        tl_eff = max(128, (tl // 128) * 128)  # mask lane dim needs %128 == 0
        l_pad = _round_up(L, tl_eff)
    nb, nl = B // tb_eff, l_pad // tl_eff

    # --- small side inputs ---------------------------------------------------
    # Lane-dense bf16 mask [B, 1, L]; exact 0/1 values so bf16 loses nothing.
    mask = (tokens > 2).astype(jnp.bfloat16)[:, None, :]
    # Exact valid-token counts, precomputed once (drops the cnt accumulator).
    cnt = jnp.sum(tokens > 2, axis=1).astype(jnp.float32).reshape(B, 1, 1)

    # reps should arrive in bf16 from upstream (ESM output); cast only if not.
    if reps.dtype != jnp.bfloat16:
        reps = reps.astype(jnp.bfloat16)
    if l_pad > L:
        reps = jnp.pad(reps, ((0, 0), (0, l_pad - L), (0, 0)))
        mask = jnp.pad(mask, ((0, 0), (0, 0), (0, l_pad - L)))

    # Head weights in bf16 (MXU-native, half the resident VMEM); biases f32.
    w1b, w2b = w1.astype(jnp.bfloat16), w2.astype(jnp.bfloat16)
    w3b, w4b = w3.astype(jnp.bfloat16), w4.astype(jnp.bfloat16)

    # --- VMEM budget (double-buffered blocks + scratch) ----------------------
    reps_blk = tb_eff * tl_eff * D_EMB * 2
    mask_blk = tb_eff * 8 * tl_eff * 2
    w_bytes = (D_EMB * H1 + H1 * H2 + H2 * H3 + H3 * H4) * 2
    b_bytes = 4 * 8 * 128 * 4
    out_blks = tb_eff * 8 * (D_EMB + H1 + 3 * 128) * 4
    cnt_blk = tb_eff * 8 * 128 * 4
    acc_scratch = tb_eff * 8 * D_EMB * 4
    need = 2 * (reps_blk + mask_blk + w_bytes + b_bytes + out_blks + cnt_blk)
    need += acc_scratch
    vmem_bytes = int(min(max(need + (8 << 20), 32 << 20), 96 << 20))

    const_spec = lambda shape: pl.BlockSpec(shape, lambda b, l: (0, 0))

    grid_spec = pltpu.PrefetchScalarGridSpec(
        num_scalar_prefetch=0,
        grid=(nb, nl),
        in_specs=[
            pl.BlockSpec((tb_eff, tl_eff, D_EMB), lambda b, l: (b, l, 0)),  # reps
            pl.BlockSpec((tb_eff, 1, tl_eff), lambda b, l: (b, 0, l)),      # mask
            pl.BlockSpec((tb_eff, 1, 1), lambda b, l: (b, 0, 0)),           # counts
            const_spec((D_EMB, H1)), const_spec((1, H1)),
            const_spec((H1, H2)), const_spec((1, H2)),
            const_spec((H2, H3)), const_spec((1, H3)),
            const_spec((H3, H4)), const_spec((1, H4)),
        ],
        out_specs=[
            pl.BlockSpec((tb_eff, 1, D_EMB), lambda b, l: (b, 0, 0)),
            pl.BlockSpec((tb_eff, 1, H1), lambda b, l: (b, 0, 0)),
            pl.BlockSpec((tb_eff, 1, H2), lambda b, l: (b, 0, 0)),
            pl.BlockSpec((tb_eff, 1, H3), lambda b, l: (b, 0, 0)),
            pl.BlockSpec((tb_eff, 1, H4), lambda b, l: (b, 0, 0)),
        ],
        scratch_shapes=[
            pltpu.VMEM((tb_eff, 1, D_EMB), jnp.float32),   # masked-sum acc
        ],
    )

    outs = pl.pallas_call(
        _head_kernel,
        out_shape=(
            jax.ShapeDtypeStruct((B, 1, D_EMB), jnp.float32),
            jax.ShapeDtypeStruct((B, 1, H1), jnp.float32),
            jax.ShapeDtypeStruct((B, 1, H2), jnp.float32),
            jax.ShapeDtypeStruct((B, 1, H3), jnp.float32),
            jax.ShapeDtypeStruct((B, 1, H4), jnp.float32),
        ),
        grid_spec=grid_spec,
        compiler_params=pltpu.CompilerParams(
            dimension_semantics=("parallel", "arbitrary"),
            vmem_limit_bytes=vmem_bytes,
        ),
    )(reps, mask, cnt,
      w1b, b1.reshape(1, -1), w2b, b2.reshape(1, -1),
      w3b, b3.reshape(1, -1), w4b, b4.reshape(1, -1))

    # Same structure as the PyTorch forward's `ret` list ([B, H] each).
    return [o[:, 0, :] for o in outs]


def make_params(key):
    ks = jax.random.split(key, 8)

    def lin(kw, kb, fan_in, fan_out):
        bound = 1.0 / jnp.sqrt(fan_in)
        w = jax.random.uniform(kw, (fan_in, fan_out), jnp.float32, -bound, bound)
        b = jax.random.uniform(kb, (fan_out,), jnp.float32, -bound, bound)
        return w, b

    w1, b1 = lin(ks[0], ks[1], D_EMB, H1)
    w2, b2 = lin(ks[2], ks[3], H1, H2)
    w3, b3 = lin(ks[4], ks[5], H2, H3)
    w4, b4 = lin(ks[6], ks[7], H3, H4)
    return (w1, b1, w2, b2, w3, b3, w4, b4)


def synthetic_esm_representation(tokens, key, vocab=33):
    # TODO(synk): deterministic stand-in for the esm2_t33_650M layer-33
    # representations (the pretrained transformer stack is a checkpoint load).
    # Emitted directly in bf16 so the kernel wrapper never copies the tensor.
    table = (jax.random.normal(key, (vocab, D_EMB), jnp.float32) * 0.02
             ).astype(jnp.bfloat16)
    return table[tokens]  # [B, L, D_EMB] bf16


def reference_head(tokens, reps, params):
    # Pure-JAX reference mirroring the PyTorch forward (post-ESM part), using
    # the same bf16 representations / bf16 weights / f32 accumulation as the
    # kernel (accepted tolerance vs a pure-f32 PyTorch run).
    w1, b1, w2, b2, w3, b3, w4, b4 = params
    t = tokens[..., None]                               # unsqueeze(-1)
    x = jnp.where(t <= 2, 0.0, reps.astype(jnp.float32))
    num = jnp.sum(t > 2, axis=1).astype(jnp.float32)    # [B, 1]
    x = jnp.sum(x, axis=1) / num
    ret = [x]

    def lin(a, w, b):
        return jnp.dot(a.astype(jnp.bfloat16), w.astype(jnp.bfloat16),
                       preferred_element_type=jnp.float32) + b

    x = jax.nn.relu(lin(x, w1, b1)); ret.append(x)
    x = jax.nn.relu(lin(x, w2, b2)); ret.append(x)
    x = jax.nn.relu(lin(x, w3, b3)); ret.append(x)
    ret.append(lin(x, w4, b4))
    return ret


if __name__ == "__main__":
    key = jax.random.PRNGKey(0)
    k_par, k_emb = jax.random.split(key, 2)

    # Demo shapes: B=2 sequences of length 256 (cls + residues + eos + pad).
    B, L = 2, 256
    rows = []
    for r, n in enumerate((200, 131)):
        residues = 4 + (jnp.arange(n, dtype=jnp.int32) * (r + 3)) % 29
        row = jnp.concatenate([
            jnp.array([0], jnp.int32), residues, jnp.array([2], jnp.int32),
            jnp.full((L - n - 2,), 1, jnp.int32)])
        rows.append(row)
    tokens = jnp.stack(rows)
    assert tokens.shape == (B, L)

    params = make_params(k_par)
    reps = synthetic_esm_representation(tokens, k_emb)   # [B, L, 1280] bf16

    # tl=128 so the demo exercises multi-tile seq accumulation (nl=2) and the
    # automatic batch-tile shrink gives nb=2 (both TensorCores on v7x).
    outs = model_binary_head(tokens, reps, params, tb=8, tl=128)
    outs = [jax.block_until_ready(o) for o in outs]

    refs = reference_head(tokens, reps, params)
    for o, r in zip(outs, refs):
        assert o.shape == r.shape
        assert jnp.allclose(o, r, rtol=2e-2, atol=1e-4), "mismatch vs reference"

    print("KERNEL_OK")
</pallas_src>

<mosaic_0001>
module attributes {stable_mosaic.version = 11 : i64} {
  func.func @_head_kernel(%arg0: i32, %arg1: i32, %arg2: memref<1x128x1280xbf16, #tpu.memory_space<vmem>>, %arg3: memref<1x1x128xbf16, #tpu.memory_space<vmem>>, %arg4: memref<1x1x1xf32, #tpu.memory_space<vmem>>, %arg5: memref<1280x320xbf16, #tpu.memory_space<vmem>>, %arg6: memref<1x320xf32, #tpu.memory_space<vmem>>, %arg7: memref<320x80xbf16, #tpu.memory_space<vmem>>, %arg8: memref<1x80xf32, #tpu.memory_space<vmem>>, %arg9: memref<80x20xbf16, #tpu.memory_space<vmem>>, %arg10: memref<1x20xf32, #tpu.memory_space<vmem>>, %arg11: memref<20x2xbf16, #tpu.memory_space<vmem>>, %arg12: memref<1x2xf32, #tpu.memory_space<vmem>>, %arg13: memref<1x1x1280xf32, #tpu.memory_space<vmem>>, %arg14: memref<1x1x320xf32, #tpu.memory_space<vmem>>, %arg15: memref<1x1x80xf32, #tpu.memory_space<vmem>>, %arg16: memref<1x1x20xf32, #tpu.memory_space<vmem>>, %arg17: memref<1x1x2xf32, #tpu.memory_space<vmem>>, %arg18: memref<1x1x1280xf32, #tpu.memory_space<vmem>>) attributes {dimension_semantics = [#tpu.dimension_semantics<parallel>, #tpu.dimension_semantics<arbitrary>], iteration_bounds = array<i64: 2, 2>, scalar_prefetch = 0 : i64, scratch_operands = 1 : i64, tpu.core_type = #tpu.core_type<tc>, window_params = [{transform_indices = @transform_0, window_bounds = array<i64: 1, 128, 1280>}, {transform_indices = @transform_1, window_bounds = array<i64: 1, 1, 128>}, {transform_indices = @transform_2, window_bounds = array<i64: 1, 1, 1>}, {pipeline_mode = #tpu.pipeline_mode<synchronous>, transform_indices = @transform_3, window_bounds = array<i64: 1280, 320>}, {pipeline_mode = #tpu.pipeline_mode<synchronous>, transform_indices = @transform_4, window_bounds = array<i64: 1, 320>}, {pipeline_mode = #tpu.pipeline_mode<synchronous>, transform_indices = @transform_5, window_bounds = array<i64: 320, 80>}, {pipeline_mode = #tpu.pipeline_mode<synchronous>, transform_indices = @transform_6, window_bounds = array<i64: 1, 80>}, {pipeline_mode = #tpu.pipeline_mode<synchronous>, transform_indices = @transform_7, window_bounds = array<i64: 80, 20>}, {pipeline_mode = #tpu.pipeline_mode<synchronous>, transform_indices = @transform_8, window_bounds = array<i64: 1, 20>}, {pipeline_mode = #tpu.pipeline_mode<synchronous>, transform_indices = @transform_9, window_bounds = array<i64: 20, 2>}, {pipeline_mode = #tpu.pipeline_mode<synchronous>, transform_indices = @transform_10, window_bounds = array<i64: 1, 2>}, {transform_indices = @transform_11, window_bounds = array<i64: 1, 1, 1280>}, {transform_indices = @transform_12, window_bounds = array<i64: 1, 1, 320>}, {transform_indices = @transform_13, window_bounds = array<i64: 1, 1, 80>}, {transform_indices = @transform_14, window_bounds = array<i64: 1, 1, 20>}, {transform_indices = @transform_15, window_bounds = array<i64: 1, 1, 2>}]} {
    %c0_i32 = arith.constant 0 : i32
    %0 = arith.cmpi eq, %arg1, %c0_i32 : i32
    %1 = arith.extui %0 : i1 to i32
    %c0_i32_0 = arith.constant 0 : i32
    %2 = arith.cmpi ne, %1, %c0_i32_0 : i32
    scf.if %2 {
      %cst_13 = arith.constant 0.000000e+00 : f32
      %12 = vector.broadcast %cst_13 : f32 to vector<1x1x1280xf32>
      %c0_14 = arith.constant 0 : index
      %c0_15 = arith.constant 0 : index
      %c0_16 = arith.constant 0 : index
      %13 = vector.load %arg18[%c0_14, %c0_15, %c0_16] : memref<1x1x1280xf32, #tpu.memory_space<vmem>>, vector<1x1x1280xf32>
      tpu.vector_store %arg18[%c0_14, %c0_15, %c0_16], %12 {strides = array<i32>} : memref<1x1x1280xf32, #tpu.memory_space<vmem>>, vector<1x1x1280xf32>,
    } else {
    }
    %c0 = arith.constant 0 : index
    %c0_1 = arith.constant 0 : index
    %c0_2 = arith.constant 0 : index
    %3 = vector.load %arg18[%c0, %c0_1, %c0_2] : memref<1x1x1280xf32, #tpu.memory_space<vmem>>, vector<1x1x1280xf32>
    %c0_3 = arith.constant 0 : index
    %c0_4 = arith.constant 0 : index
    %c0_5 = arith.constant 0 : index
    %4 = vector.load %arg3[%c0_3, %c0_4, %c0_5] : memref<1x1x128xbf16, #tpu.memory_space<vmem>>, vector<1x1x128xbf16>
    %c0_6 = arith.constant 0 : index
    %c0_7 = arith.constant 0 : index
    %c0_8 = arith.constant 0 : index
    %5 = vector.load %arg2[%c0_6, %c0_7, %c0_8] : memref<1x128x1280xbf16, #tpu.memory_space<vmem>>, vector<1x128x1280xbf16>
    "tpu.trace_start"() <{level = 10 : i32, message = "bql,bld->bqd"}> : () -> ()
    %cst = arith.constant dense<0.000000e+00> : vector<1x1x1280xf32>
    %6 = tpu.matmul %4, %5, %cst {dimension_numbers = #tpu.dot_dimension_numbers<[2], [1], [1], [2], [0, 0, 0, 1, 1, 2], [0], [0]>} : vector<1x1x128xbf16>, vector<1x128x1280xbf16>, vector<1x1x1280xf32> -> vector<1x1x1280xf32>
    "tpu.trace_stop"() : () -> ()
    %7 = arith.addf %3, %6 : vector<1x1x1280xf32>
    %c0_9 = arith.constant 0 : index
    %c0_10 = arith.constant 0 : index
    %c0_11 = arith.constant 0 : index
    %8 = vector.load %arg18[%c0_9, %c0_10, %c0_11] : memref<1x1x1280xf32, #tpu.memory_space<vmem>>, vector<1x1x1280xf32>
    tpu.vector_store %arg18[%c0_9, %c0_10, %c0_11], %7 {strides = array<i32>} : memref<1x1x1280xf32, #tpu.memory_space<vmem>>, vector<1x1x1280xf32>,
    %c1_i32 = arith.constant 1 : i32
    %9 = arith.cmpi eq, %arg1, %c1_i32 : i32
    %10 = arith.extui %9 : i1 to i32
    %c0_i32_12 = arith.constant 0 : i32
    %11 = arith.cmpi ne, %10, %c0_i32_12 : i32
    scf.if %11 {
      %c0_13 = arith.constant 0 : index
      %c0_14 = arith.constant 0 : index
      %c0_15 = arith.constant 0 : index
      %12 = vector.load %arg18[%c0_13, %c0_14, %c0_15] : memref<1x1x1280xf32, #tpu.memory_space<vmem>>, vector<1x1x1280xf32>
      %c0_16 = arith.constant 0 : index
      %c0_17 = arith.constant 0 : index
      %c0_18 = arith.constant 0 : index
      %13 = vector.load %arg4[%c0_16, %c0_17, %c0_18] : memref<1x1x1xf32, #tpu.memory_space<vmem>>, vector<1x1x1xf32>
      %14 = vector.broadcast %13 : vector<1x1x1xf32> to vector<1x1x1280xf32>
      %15 = arith.divf %12, %14 : vector<1x1x1280xf32>
      %c0_19 = arith.constant 0 : index
      %c0_20 = arith.constant 0 : index
      %c0_21 = arith.constant 0 : index
      %16 = vector.load %arg13[%c0_19, %c0_20, %c0_21] : memref<1x1x1280xf32, #tpu.memory_space<vmem>>, vector<1x1x1280xf32>
      tpu.vector_store %arg13[%c0_19, %c0_20, %c0_21], %15 {strides = array<i32>} : memref<1x1x1280xf32, #tpu.memory_space<vmem>>, vector<1x1x1280xf32>,
      %17 = vector.shape_cast %15 : vector<1x1x1280xf32> to vector<1x1280xf32>
      %18 = arith.truncf %17 : vector<1x1280xf32> to vector<1x1280xbf16>
      %c0_22 = arith.constant 0 : index
      %c0_23 = arith.constant 0 : index
      %19 = vector.load %arg5[%c0_22, %c0_23] : memref<1280x320xbf16, #tpu.memory_space<vmem>>, vector<1280x320xbf16>
      %cst_24 = arith.constant dense<0.000000e+00> : vector<1x320xf32>
      %20 = tpu.matmul %18, %19, %cst_24 {dimension_numbers = #tpu.dot_dimension_numbers<[1], [0], [0], [1], [0, 0, 1, 1], [], []>} : vector<1x1280xbf16>, vector<1280x320xbf16>, vector<1x320xf32> -> vector<1x320xf32>
      %c0_25 = arith.constant 0 : index
      %c0_26 = arith.constant 0 : index
      %21 = vector.load %arg6[%c0_25, %c0_26] : memref<1x320xf32, #tpu.memory_space<vmem>>, vector<1x320xf32>
      %22 = arith.addf %20, %21 : vector<1x320xf32>
      %cst_27 = arith.constant 0.000000e+00 : f32
      %23 = vector.broadcast %cst_27 : f32 to vector<1x320xf32>
      %24 = arith.maximumf %22, %23 : vector<1x320xf32>
      %25 = vector.shape_cast %24 : vector<1x320xf32> to vector<1x1x320xf32>
      %c0_28 = arith.constant 0 : index
      %c0_29 = arith.constant 0 : index
      %c0_30 = arith.constant 0 : index
      %26 = vector.load %arg14[%c0_28, %c0_29, %c0_30] : memref<1x1x320xf32, #tpu.memory_space<vmem>>, vector<1x1x320xf32>
      tpu.vector_store %arg14[%c0_28, %c0_29, %c0_30], %25 {strides = array<i32>} : memref<1x1x320xf32, #tpu.memory_space<vmem>>, vector<1x1x320xf32>,
      %27 = arith.truncf %24 : vector<1x320xf32> to vector<1x320xbf16>
      %c0_31 = arith.constant 0 : index
      %c0_32 = arith.constant 0 : index
      %28 = vector.load %arg7[%c0_31, %c0_32] : memref<320x80xbf16, #tpu.memory_space<vmem>>, vector<320x80xbf16>
      %cst_33 = arith.constant dense<0.000000e+00> : vector<1x80xf32>
      %29 = tpu.matmul %27, %28, %cst_33 {dimension_numbers = #tpu.dot_dimension_numbers<[1], [0], [0], [1], [0, 0, 1, 1], [], []>} : vector<1x320xbf16>, vector<320x80xbf16>, vector<1x80xf32> -> vector<1x80xf32>
      %c0_34 = arith.constant 0 : index
      %c0_35 = arith.constant 0 : index
      %30 = vector.load %arg8[%c0_34, %c0_35] : memref<1x80xf32, #tpu.memory_space<vmem>>, vector<1x80xf32>
      %31 = arith.addf %29, %30 : vector<1x80xf32>
      %cst_36 = arith.constant 0.000000e+00 : f32
      %32 = vector.broadcast %cst_36 : f32 to vector<1x80xf32>
      %33 = arith.maximumf %31, %32 : vector<1x80xf32>
      %34 = vector.shape_cast %33 : vector<1x80xf32> to vector<1x1x80xf32>
      %c0_37 = arith.constant 0 : index
      %c0_38 = arith.constant 0 : index
      %c0_39 = arith.constant 0 : index
      %35 = vector.load %arg15[%c0_37, %c0_38, %c0_39] : memref<1x1x80xf32, #tpu.memory_space<vmem>>, vector<1x1x80xf32>
      tpu.vector_store %arg15[%c0_37, %c0_38, %c0_39], %34 {strides = array<i32>} : memref<1x1x80xf32, #tpu.memory_space<vmem>>, vector<1x1x80xf32>,
      %36 = arith.truncf %33 : vector<1x80xf32> to vector<1x80xbf16>
      %c0_40 = arith.constant 0 : index
      %c0_41 = arith.constant 0 : index
      %37 = vector.load %arg9[%c0_40, %c0_41] : memref<80x20xbf16, #tpu.memory_space<vmem>>, vector<80x20xbf16>
      %cst_42 = arith.constant dense<0.000000e+00> : vector<1x20xf32>
      %38 = tpu.matmul %36, %37, %cst_42 {dimension_numbers = #tpu.dot_dimension_numbers<[1], [0], [0], [1], [0, 0, 1, 1], [], []>} : vector<1x80xbf16>, vector<80x20xbf16>, vector<1x20xf32> -> vector<1x20xf32>
      %c0_43 = arith.constant 0 : index
      %c0_44 = arith.constant 0 : index
      %39 = vector.load %arg10[%c0_43, %c0_44] : memref<1x20xf32, #tpu.memory_space<vmem>>, vector<1x20xf32>
      %40 = arith.addf %38, %39 : vector<1x20xf32>
      %cst_45 = arith.constant 0.000000e+00 : f32
      %41 = vector.broadcast %cst_45 : f32 to vector<1x20xf32>
      %42 = arith.maximumf %40, %41 : vector<1x20xf32>
      %43 = vector.shape_cast %42 : vector<1x20xf32> to vector<1x1x20xf32>
      %c0_46 = arith.constant 0 : index
      %c0_47 = arith.constant 0 : index
      %c0_48 = arith.constant 0 : index
      %44 = vector.load %arg16[%c0_46, %c0_47, %c0_48] : memref<1x1x20xf32, #tpu.memory_space<vmem>>, vector<1x1x20xf32>
      tpu.vector_store %arg16[%c0_46, %c0_47, %c0_48], %43 {strides = array<i32>} : memref<1x1x20xf32, #tpu.memory_space<vmem>>, vector<1x1x20xf32>,
      %45 = arith.truncf %42 : vector<1x20xf32> to vector<1x20xbf16>
      %c0_49 = arith.constant 0 : index
      %c0_50 = arith.constant 0 : index
      %46 = vector.load %arg11[%c0_49, %c0_50] : memref<20x2xbf16, #tpu.memory_space<vmem>>, vector<20x2xbf16>
      %cst_51 = arith.constant dense<0.000000e+00> : vector<1x2xf32>
      %47 = tpu.matmul %45, %46, %cst_51 {dimension_numbers = #tpu.dot_dimension_numbers<[1], [0], [0], [1], [0, 0, 1, 1], [], []>} : vector<1x20xbf16>, vector<20x2xbf16>, vector<1x2xf32> -> vector<1x2xf32>
      %c0_52 = arith.constant 0 : index
      %c0_53 = arith.constant 0 : index
      %48 = vector.load %arg12[%c0_52, %c0_53] : memref<1x2xf32, #tpu.memory_space<vmem>>, vector<1x2xf32>
      %49 = arith.addf %47, %48 : vector<1x2xf32>
      %50 = vector.shape_cast %49 : vector<1x2xf32> to vector<1x1x2xf32>
      %c0_54 = arith.constant 0 : index
      %c0_55 = arith.constant 0 : index
      %c0_56 = arith.constant 0 : index
      %51 = vector.load %arg17[%c0_54, %c0_55, %c0_56] : memref<1x1x2xf32, #tpu.memory_space<vmem>>, vector<1x1x2xf32>
      tpu.vector_store %arg17[%c0_54, %c0_55, %c0_56], %50 {strides = array<i32>} : memref<1x1x2xf32, #tpu.memory_space<vmem>>, vector<1x1x2xf32>,
    } else {
    }
    return
  }
  func.func @transform_0(%arg0: i32, %arg1: i32) -> (i32, i32, i32) {
    %c0_i32 = arith.constant 0 : i32
    %c0_i32_0 = arith.constant 0 : i32
    return %arg0, %arg1, %c0_i32 : i32, i32, i32
  }
  func.func @transform_1(%arg0: i32, %arg1: i32) -> (i32, i32, i32) {
    %c0_i32 = arith.constant 0 : i32
    %c0_i32_0 = arith.constant 0 : i32
    return %arg0, %c0_i32, %arg1 : i32, i32, i32
  }
  func.func @transform_2(%arg0: i32, %arg1: i32) -> (i32, i32, i32) {
    %c0_i32 = arith.constant 0 : i32
    %c0_i32_0 = arith.constant 0 : i32
    %c0_i32_1 = arith.constant 0 : i32
    return %arg0, %c0_i32, %c0_i32_0 : i32, i32, i32
  }
  func.func @transform_3(%arg0: i32, %arg1: i32) -> (i32, i32) {
    %c0_i32 = arith.constant 0 : i32
    %c0_i32_0 = arith.constant 0 : i32
    %c0_i32_1 = arith.constant 0 : i32
    return %c0_i32, %c0_i32_0 : i32, i32
  }
  func.func @transform_4(%arg0: i32, %arg1: i32) -> (i32, i32) {
    %c0_i32 = arith.constant 0 : i32
    %c0_i32_0 = arith.constant 0 : i32
    %c0_i32_1 = arith.constant 0 : i32
    return %c0_i32, %c0_i32_0 : i32, i32
  }
  func.func @transform_5(%arg0: i32, %arg1: i32) -> (i32, i32) {
    %c0_i32 = arith.constant 0 : i32
    %c0_i32_0 = arith.constant 0 : i32
    %c0_i32_1 = arith.constant 0 : i32
    return %c0_i32, %c0_i32_0 : i32, i32
  }
  func.func @transform_6(%arg0: i32, %arg1: i32) -> (i32, i32) {
    %c0_i32 = arith.constant 0 : i32
    %c0_i32_0 = arith.constant 0 : i32
    %c0_i32_1 = arith.constant 0 : i32
    return %c0_i32, %c0_i32_0 : i32, i32
  }
  func.func @transform_7(%arg0: i32, %arg1: i32) -> (i32, i32) {
    %c0_i32 = arith.constant 0 : i32
    %c0_i32_0 = arith.constant 0 : i32
    %c0_i32_1 = arith.constant 0 : i32
    return %c0_i32, %c0_i32_0 : i32, i32
  }
  func.func @transform_8(%arg0: i32, %arg1: i32) -> (i32, i32) {
    %c0_i32 = arith.constant 0 : i32
    %c0_i32_0 = arith.constant 0 : i32
    %c0_i32_1 = arith.constant 0 : i32
    return %c0_i32, %c0_i32_0 : i32, i32
  }
  func.func @transform_9(%arg0: i32, %arg1: i32) -> (i32, i32) {
    %c0_i32 = arith.constant 0 : i32
    %c0_i32_0 = arith.constant 0 : i32
    %c0_i32_1 = arith.constant 0 : i32
    return %c0_i32, %c0_i32_0 : i32, i32
  }
  func.func @transform_10(%arg0: i32, %arg1: i32) -> (i32, i32) {
    %c0_i32 = arith.constant 0 : i32
    %c0_i32_0 = arith.constant 0 : i32
    %c0_i32_1 = arith.constant 0 : i32
    return %c0_i32, %c0_i32_0 : i32, i32
  }
  func.func @transform_11(%arg0: i32, %arg1: i32) -> (i32, i32, i32) {
    %c0_i32 = arith.constant 0 : i32
    %c0_i32_0 = arith.constant 0 : i32
    %c0_i32_1 = arith.constant 0 : i32
    return %arg0, %c0_i32, %c0_i32_0 : i32, i32, i32
  }
  func.func @transform_12(%arg0: i32, %arg1: i32) -> (i32, i32, i32) {
    %c0_i32 = arith.constant 0 : i32
    %c0_i32_0 = arith.constant 0 : i32
    %c0_i32_1 = arith.constant 0 : i32
    return %arg0, %c0_i32, %c0_i32_0 : i32, i32, i32
  }
  func.func @transform_13(%arg0: i32, %arg1: i32) -> (i32, i32, i32) {
    %c0_i32 = arith.constant 0 : i32
    %c0_i32_0 = arith.constant 0 : i32
    %c0_i32_1 = arith.constant 0 : i32
    return %arg0, %c0_i32, %c0_i32_0 : i32, i32, i32
  }
  func.func @transform_14(%arg0: i32, %arg1: i32) -> (i32, i32, i32) {
    %c0_i32 = arith.constant 0 : i32
    %c0_i32_0 = arith.constant 0 : i32
    %c0_i32_1 = arith.constant 0 : i32
    return %arg0, %c0_i32, %c0_i32_0 : i32, i32, i32
  }
  func.func @transform_15(%arg0: i32, %arg1: i32) -> (i32, i32, i32) {
    %c0_i32 = arith.constant 0 : i32
    %c0_i32_0 = arith.constant 0 : i32
    %c0_i32_1 = arith.constant 0 : i32
    return %arg0, %c0_i32, %c0_i32_0 : i32, i32, i32
  }
}

</mosaic_0001>

<bundles_post_ra>
// kernel: model_binary_head.1
= control target key start
LH: loop header
LB: loop body
LE: loop exit
PB: predicated region body
PF: predicated region fallthrough
CT: control target
= control target key end

     0   :  { %s6841_s0 = inlined_call_operand.vmem [shape: bf16[2,256,1280], index: 0, kind: input, shape index: {}]   ;;  %s6842_s1 = inlined_call_operand.vmem [shape: bf16[2,1,256], index: 1, kind: input, shape index: {}]   ;;  %s6843_s2 = inlined_call_operand.vmem [shape: f32[2,1,1], index: 2, kind: input, shape index: {}]   ;;  %s6844_s3 = inlined_call_operand.vmem [shape: bf16[1280,320], index: 3, kind: input, shape index: {}]   ;;  %s6845_s4 = inlined_call_operand.vmem [shape: f32[1,320], index: 4, kind: input, shape index: {}]   ;;  %s6846_s5 = inlined_call_operand.vmem [shape: bf16[320,80], index: 5, kind: input, shape index: {}]   ;;  %s6847_s6 = inlined_call_operand.vmem [shape: f32[1,80], index: 6, kind: input, shape index: {}]   ;;  %s6848_s7 = inlined_call_operand.vmem [shape: bf16[80,20], index: 7, kind: input, shape index: {}]   ;;  %s6849_s8 = inlined_call_operand.vmem [shape: f32[1,20], index: 8, kind: input, shape index: {}]   ;;  %s6850_s9 = inlined_call_operand.vmem [shape: bf16[20,2], index: 9, kind: input, shape index: {}]   ;;  %s6851_s10 = inlined_call_operand.vmem [shape: f32[1,2], index: 10, kind: input, shape index: {}]   ;;  %s6852_s11 = inlined_call_operand.vmem [shape: f32[2,1,1280], index: 11, kind: output, shape index: {0}]   ;;  %s6853_s12 = inlined_call_operand.vmem [shape: f32[2,1,320], index: 12, kind: output, shape index: {1}]   ;;  %s6854_s13 = inlined_call_operand.hbm [shape: f32[2,1,80], index: 13, kind: output, shape index: {2}]   ;;  %s6855_s14 = inlined_call_operand.hbm [shape: f32[2,1,20], index: 14, kind: output, shape index: {3}]   ;;  %s6856_s15 = inlined_call_operand.hbm [shape: f32[2,1,2], index: 15, kind: output, shape index: {4}]  }
   0x1   :  { %6875 = sst [smem:[#allocation22_spill]] %s6847_s6 }
   0x2   :  { %6876 = sst [smem:[#allocation23_spill]] %s6849_s8 }
   0x3   :  { %6877 = sst [smem:[#allocation24_spill]] %s6850_s9 }
   0x4   :  { %6878 = sst [smem:[#allocation25_spill]] %s6851_s10 }
   0x5   :  { %6879 = sst [smem:[#allocation26_spill]] %s6854_s13 }
   0x6   :  { %6880 = sst [smem:[#allocation27_spill]] %s6855_s14 }
   0x7   :  { %6881 = sst [smem:[#allocation28_spill]] %s6856_s15 }
   0x8   :  { %21 = vsyncpa [#allocation4], 0 }
   0x9   :  { %23 = vsyncpa [#allocation4 + $0x1], 0 }
   0xa   :  { %24 = vsyncpa [#allocation6], 0 }
   0xb   :  { %26 = vsyncpa [#allocation6 + $0x1], 0  ;;  %s5554_s18 = smov 0   ;;  %s5556_s19 = smov 0  }
   0xc   :  { %s5558_s20 = smov 0   ;;  %s5560_s21 = smov 0  }
   0xd   :  { %s5562_s22 = smov 0   ;;  %s5564_s23 = smov 0  }
   0xe   :  { %s5566_s24 = smov 0   ;;  %s5568_s25 = smov 0  }
   0xf LB: > { %6882 = sst [smem:[#allocation10_spill]] %s5435_s18  ;;  %s6857_s26 = sadd.s32 4294967295, %s5463_s25   ;;  %s5463_s25 = sphi %s5568_s25, %s32_s25   ;;  %s5459_s24 = sphi %s5566_s24, %s6921_s24   ;;  %s5455_s23 = sphi %s5564_s23, %s6920_s23   ;;  %s5451_s22 = sphi %s5562_s22, %s6919_s22   ;;  %s5447_s21 = sphi %s5560_s21, %s6918_s21   ;;  %s5443_s20 = sphi %s5558_s20, %s6917_s20   ;;  %s5439_s19 = sphi %s5556_s19, %s6916_s19   ;;  %s5435_s18 = sphi %s5554_s18, %s6915_s18  }
  0x10   : > { %6883 = sst [smem:[#allocation11_spill]] %s5439_s19  ;;  %s6858_s27 = sadd.s32 4294967294, %s5463_s25  }
  0x11   : > { %6884 = sst [smem:[#allocation12_spill]] %s5443_s20  ;;  %s41_s28 = sadd.s32 1, %s5455_s23 }
  0x12   : > { %6885 = sst [smem:[#allocation13_spill]] %s5451_s22  ;;  %p42_p0 = scmp.ge.s32.totalorder %s41_s28, 2 }
  0x13   : > { %6886 = sst [smem:[#allocation14_spill]] %s5455_s23  ;;  %s44_s29 = sadd.s32 1, %s5459_s24 }
  0x14   : > { %6887 = sst [smem:[#allocation15_spill]] %s5459_s24  ;;  %p363_p1 = scmp.ne.s32.totalorder %s5443_s20, %s5439_s19 }
  0x15   : > { %6888 = sst [smem:[#allocation16_spill]] %s5463_s25  ;;  %p364_p2 = scmp.eq.s32.totalorder %s6857_s26, 3 }
  0x16   : > { %s6923_s28 = smov (%p42_p0, %s41_s28), 0  ;;  %s6925_s29 = smov (!%p42_p0, %s44_s29), %s5459_s24 }
  0x17   : > { %6889 = sst [smem:[#allocation17_spill]] %s6923_s28  ;;  %p5605_p3 = por %p364_p2, %p363_p1 }
  0x18   : > { %p369_p4 = scmp.ne.s32.totalorder %s5439_s19, %s5435_s18  ;;  %p46_p5 = scmp.ge.s32.totalorder %s6925_s29, 2 }
  0x19   : > { %s6890_s30 = scalar_select %p5605_p3, 1, 0 }
  0x1a   : > { %p370_p6 = scmp.eq.s32.totalorder %s6858_s27, 3  ;;  %p4191_p7 = scmp.ge.s32.totalorder %s5463_s25, 1 }
  0x1b   : > { %6891 = sst [smem:[#allocation18_spill]] %s6890_s30  ;;  %p494_p8 = scmp.lt.s32.totalorder %s5463_s25, 5 }
  0x1c   : > { %s6927_s29 = smov (%p46_p5, %s6925_s29), 0  ;;  %p5617_p9 = por %p370_p6, %p369_p4 }
  0x1d   : > { %6892 = sst [smem:[#allocation19_spill]] %s6927_s29  ;;  %p495_p10 = pnand %p4191_p7, %p494_p8 }
  0x1e   : > { %s6893_s16 = scalar_select %p5617_p9, 1, 0 }
  0x1f   : > { %s350_s17 = ssub.s32 %s5459_s24, %s6927_s29  ;;  %s353_s26 = sadd.s32 1, %s5443_s20 }
  0x20   : > { %6894 = sst [smem:[#allocation20_spill]] %s6893_s16  ;;  %p351_p11 = scmp.eq.s32.totalorder %s350_s17, 0 }
  0x21   : > { %498 = sbr.rel (%p495_p10) target bundleno = 1542 (0x606), region = 64  ;;  %s5628_s27 = sand.u32 (!%p495_p10), 1, %s5439_s19  }
  0x22   : > { %s5625_s28 = scalar_select %p351_p11, %s5443_s20, %s353_s26  }
  0x23   : > { %s4192_s23 = sshll.u32 (!%p495_p10), %s5447_s21, 4  ;;  %p573_p12 = scmp.lt.s32.totalorder (!%p495_p10), %s5451_s22, 1 }
  0x24   : > { %6895 = sst [smem:[#allocation21_spill]] %s5625_s28  ;;  %p575_p13 = scmp.lt.s32.totalorder (!%p495_p10), %s4192_s23, 31 }
  0x25   : > { %p585_p0 = scmp.lt.s32.totalorder (!%p495_p10), %s5447_s21, 1  ;;  %s571_s30 = scalar_lea.vmem (!%p495_p10), [#allocation7], %s5628_s27 }
  0x26   : > { %p4195_p1 = scmp.ne.s32.totalorder (!%p495_p10), %s5447_s21, 0 }
  0x28   : > { %s5634_s16 = scalar_select %p573_p12, %s5451_s22, 1 }
  0x29   : > { %s6929_s23 = smov (!%p575_p13, %s4192_s23), 31  ;;  %s565_s22 = scalar_lea.vmem [#allocation5], %s5628_s27  ;;  %v607_v0 = vlaneseq (!%p4195_p1)  ;;  %v5465_v1 = vmov (!%p4195_p1), 0.0  }
  0x2a   : > { %s4749_s26 = smul.u32 320, %s5634_s16  ;;  %s4194_s17 = sshll.u32 %s5634_s16, 1  ;;  %606 = vst [vmem:[#allocation2] sm:$0xff] (!%p4195_p1), %v5465_v1 }
  0x2b   : > { %s4748_s29 = smul.u32 10, %s6929_s23  ;;  %s592_s20 = scalar_lea.vmem %s6843_s2, %s5634_s16  ;;  %vm609_vm0 = vcmp.lt.s32.totalorder (!%p4195_p1), %v607_v0, 256 }
  0x2c   : > { %s586_s19 = scalar_select %p585_p0, %s5447_s21, 1 }
  0x2d   : > { %s579_s18 = sadd.s32 %s4749_s26, %s4748_s29  ;;  %s4750_s15 = smul.u32 10, %s5634_s16  ;;  %611 = vst.msk [vmem:[#allocation2 + $0x8] sm:$0x3] (!%p4195_p1), %vm609_vm0, %v5465_v1 }
  0x2e   : > { %s4193_s13 = sshll.u32 %s579_s18, 2  ;;  %s5644_s14 = sadd.s32 %s4194_s17, %s586_s19 }
  0x2f   : > { %s5649_s25 = scalar_lea.vmem %s6841_s0, %s4193_s13  ;;  %s589_s23 = scalar_lea.vmem %s6842_s1, %s5644_s14 }
  0x30   : > { %s5658_s24 = scalar_lea.vmem %s6852_s11, %s4750_s15  ;;  %s4751_s28 = smul.u32 3, %s5634_s16 }
  0x31   : > { %s559_s26 = scalar_lea.vmem [#allocation3], %s5628_s27  ;;  %605 = sbr.rel (%p4195_p1) target bundleno = 56 (0x38), region = 68 }
  0x32   : > { %s5664_s19 = scalar_lea.vmem %s6853_s12, %s4751_s28 }
  0x38 PF: > { %v4839_v2 = vld [vmem:[%s5649_s25 + $0x4] ss:$40 sps:$4 sm:$0xff]   ;;  %v5466_v4 = vmov 0   ;;  %v4843_v5 = vld [vmem:[%s5649_s25] ss:$40 sps:$4 sm:$0xff]   ;;  %p4276_p2 = scmp.ne.s32.totalorder %s5447_s21, 1 }
  0x39   : > { %v4841_v3 = vld [vmem:[%s5649_s25 + $0xc] ss:$40 sps:$4 sm:$0xff]   ;;  %1127 = vmatprep.mubr.bf16.mxu0 %v5466_v4  ;;  %1168 = vmatprep.mubr.bf16.mxu1 %v5466_v4  ;;  %v4844_v6 = vld [vmem:[%s5649_s25 + $0x8] ss:$40 sps:$4 sm:$0xff]   ;;  %v4847_v8 = vld [vmem:[%s5649_s25 + $0x5c] ss:$40 sps:$4 sm:$0xff]  }
  0x3a   : > { %1095 = vmatprep.subr.bf16.mxu0 %v4839_v2  ;;  %1136 = vmatprep.subr.bf16.mxu1 %v4841_v3  ;;  %v4845_v7 = vld [vmem:[%s5649_s25 + $0x54] ss:$40 sps:$4 sm:$0xff]   ;;  %v4849_v9 = vld [vmem:[%s5649_s25 + $0x50] ss:$40 sps:$4 sm:$0xff]   ;;  %v4851_v11 = vld [vmem:[%s5649_s25 + $0xa4] ss:$40 sps:$4 sm:$0xff]  }
  0x3b   : > { %1096 = vmatpush1.bf16.msra.mxu0 %v4843_v5  ;;  %1137 = vmatpush1.bf16.msra.mxu1 %v4844_v6  ;;  %v4850_v10 = vld [vmem:[%s5649_s25 + $0x58] ss:$40 sps:$4 sm:$0xff]   ;;  %v4853_v12 = vld [vmem:[%s5649_s25 + $0xac] ss:$40 sps:$4 sm:$0xff]   ;;  %v4856_v14 = vld [vmem:[%s5649_s25 + $0xa8] ss:$40 sps:$4 sm:$0xff]  }
  0x3c   : > { %1097 = vmatprep.subr.bf16.mxu0 %v4845_v7  ;;  %1138 = vmatprep.subr.bf16.mxu1 %v4847_v8  ;;  %v4855_v13 = vld [vmem:[%s5649_s25 + $0xa0] ss:$40 sps:$4 sm:$0xff]   ;;  %v4857_v15 = vld [vmem:[%s5649_s25 + $0xf4] ss:$40 sps:$4 sm:$0xff]   ;;  %v4861_v17 = vld [vmem:[%s5649_s25 + $0xf0] ss:$40 sps:$4 sm:$0xff]  }
  0x3d   : > { %v4859_v16 = vld [vmem:[%s5649_s25 + $0xfc] ss:$40 sps:$4 sm:$0xff]   ;;  %v4862_v18 = vld [vmem:[%s5649_s25 + $0xf8] ss:$40 sps:$4 sm:$0xff]   ;;  %v4865_v20 = vld [vmem:[%s5649_s25 + $0x14c] ss:$40 sps:$4 sm:$0xff]  }
  0x3e   : > { %v4863_v19 = vld [vmem:[%s5649_s25 + $0x144] ss:$40 sps:$4 sm:$0xff]   ;;  %v4867_v21 = vld [vmem:[%s5649_s25 + $0x140] ss:$40 sps:$4 sm:$0xff]   ;;  %v4869_v23 = vld [vmem:[%s5649_s25 + $0x194] ss:$40 sps:$4 sm:$0xff]  }
  0x3f   : > { %1098 = vmatpush1.bf16.msra.mxu0 %v4849_v9  ;;  %1139 = vmatpush1.bf16.msra.mxu1 %v4850_v10  ;;  %v4868_v22 = vld [vmem:[%s5649_s25 + $0x148] ss:$40 sps:$4 sm:$0xff]   ;;  %v4871_v24 = vld [vmem:[%s5649_s25 + $0x19c] ss:$40 sps:$4 sm:$0xff]   ;;  %v4874_v26 = vld [vmem:[%s5649_s25 + $0x198] ss:$40 sps:$4 sm:$0xff]  }
  0x40   : > { %1099 = vmatprep.subr.bf16.mxu0 %v4851_v11  ;;  %1140 = vmatprep.subr.bf16.mxu1 %v4853_v12  ;;  %v4873_v25 = vld [vmem:[%s5649_s25 + $0x190] ss:$40 sps:$4 sm:$0xff]   ;;  %v4875_v27 = vld [vmem:[%s5649_s25 + $0x1e4] ss:$40 sps:$4 sm:$0xff]   ;;  %v4879_v29 = vld [vmem:[%s5649_s25 + $0x1e0] ss:$40 sps:$4 sm:$0xff]  }
  0x41   : > { %v4877_v28 = vld [vmem:[%s5649_s25 + $0x1ec] ss:$40 sps:$4 sm:$0xff]   ;;  %v4880_v30 = vld [vmem:[%s5649_s25 + $0x1e8] ss:$40 sps:$4 sm:$0xff]   ;;  %v4883_v32 = vld [vmem:[%s5649_s25 + $0x23c] ss:$40 sps:$4 sm:$0xff]  }
  0x42   : > { %v4881_v31 = vld [vmem:[%s5649_s25 + $0x234] ss:$40 sps:$4 sm:$0xff]   ;;  %v4885_v33 = vld [vmem:[%s5649_s25 + $0x230] ss:$40 sps:$4 sm:$0xff]   ;;  %v5711_v37 = vld [vmem:[%s589_s23] sm:$0x1] }
  0x43   : > { %1100 = vmatpush1.bf16.msra.mxu0 %v4855_v13  ;;  %1141 = vmatpush1.bf16.msra.mxu1 %v4856_v14  ;;  %v4886_v34 = vld [vmem:[%s5649_s25 + $0x238] ss:$40 sps:$4 sm:$0xff]   ;;  %v4889_v35 = vld [vmem:[%s5649_s25 + $0x14] ss:$40 sps:$4 sm:$0xff]   ;;  %v4895_v40 = vld [vmem:[%s5649_s25 + $0x64] ss:$40 sps:$4 sm:$0xff]  }
  0x44   : > { %1101 = vmatprep.subr.bf16.mxu0 %v4857_v15  ;;  %1142 = vmatprep.subr.bf16.mxu1 %v4859_v16  ;;  %v4892_v36 = vld [vmem:[%s5649_s25 + $0x1c] ss:$40 sps:$4 sm:$0xff]   ;;  %v4887_v38 = vld [vmem:[%s5649_s25 + $0x10] ss:$40 sps:$4 sm:$0xff]   ;;  %v4898_v41 = vld [vmem:[%s5649_s25 + $0x6c] ss:$40 sps:$4 sm:$0xff]  }
  0x45   : > { %v4890_v39 = vld [vmem:[%s5649_s25 + $0x18] ss:$40 sps:$4 sm:$0xff]   ;;  %v4896_v43 = vld [vmem:[%s5649_s25 + $0x68] ss:$40 sps:$4 sm:$0xff]   ;;  %v4901_v44 = vld [vmem:[%s5649_s25 + $0xb4] ss:$40 sps:$4 sm:$0xff]  }
  0x46   : > { %v4893_v42 = vld [vmem:[%s5649_s25 + $0x60] ss:$40 sps:$4 sm:$0xff]   ;;  %v4904_v45 = vld [vmem:[%s5649_s25 + $0xbc] ss:$40 sps:$4 sm:$0xff]   ;;  %v4899_v46 = vld [vmem:[%s5649_s25 + $0xb0] ss:$40 sps:$4 sm:$0xff]  }
  0x47   : > { %1102 = vmatpush1.bf16.msra.mxu0 %v4861_v17  ;;  %1143 = vmatpush1.bf16.msra.mxu1 %v4862_v18  ;;  %v4902_v47 = vld [vmem:[%s5649_s25 + $0xb8] ss:$40 sps:$4 sm:$0xff]   ;;  %v4907_v48 = vld [vmem:[%s5649_s25 + $0x104] ss:$40 sps:$4 sm:$0xff]   ;;  %v4908_v51 = vld [vmem:[%s5649_s25 + $0x108] ss:$40 sps:$4 sm:$0xff]  }
  0x48   : > { %1103 = vmatprep.subr.bf16.mxu0 %v4863_v19  ;;  %1144 = vmatprep.subr.bf16.mxu1 %v4865_v20  ;;  %v4910_v49 = vld [vmem:[%s5649_s25 + $0x10c] ss:$40 sps:$4 sm:$0xff]   ;;  %v4905_v50 = vld [vmem:[%s5649_s25 + $0x100] ss:$40 sps:$4 sm:$0xff]   ;;  %v4916_v53 = vld [vmem:[%s5649_s25 + $0x15c] ss:$40 sps:$4 sm:$0xff]  }
  0x49   : > { %v4913_v52 = vld [vmem:[%s5649_s25 + $0x154] ss:$40 sps:$4 sm:$0xff]   ;;  %v4911_v54 = vld [vmem:[%s5649_s25 + $0x150] ss:$40 sps:$4 sm:$0xff]   ;;  %v4919_v56 = vld [vmem:[%s5649_s25 + $0x1a4] ss:$40 sps:$4 sm:$0xff]  }
  0x4a   : > { %v4914_v55 = vld [vmem:[%s5649_s25 + $0x158] ss:$40 sps:$4 sm:$0xff]   ;;  %v4922_v57 = vld [vmem:[%s5649_s25 + $0x1ac] ss:$40 sps:$4 sm:$0xff]   ;;  %v4920_v59 = vld [vmem:[%s5649_s25 + $0x1a8] ss:$40 sps:$4 sm:$0xff]  }
  0x4b   : > { %1104 = vmatpush1.bf16.msra.mxu0 %v4867_v21  ;;  %1145 = vmatpush1.bf16.msra.mxu1 %v4868_v22  ;;  %v4917_v58 = vld [vmem:[%s5649_s25 + $0x1a0] ss:$40 sps:$4 sm:$0xff]   ;;  %v4925_v60 = vld [vmem:[%s5649_s25 + $0x1f4] ss:$40 sps:$4 sm:$0xff]   ;;  %v4923_v62 = vld [vmem:[%s5649_s25 + $0x1f0] ss:$40 sps:$4 sm:$0xff]   ;;  %v1317_v22 = vlaneseq }
  0x4c   : > { %1105 = vmatprep.subr.bf16.mxu0 %v4869_v23  ;;  %1146 = vmatprep.subr.bf16.mxu1 %v4871_v24  ;;  %v4928_v61 = vld [vmem:[%s5649_s25 + $0x1fc] ss:$40 sps:$4 sm:$0xff]   ;;  %v4926_v63 = vld [vmem:[%s5649_s25 + $0x1f8] ss:$40 sps:$4 sm:$0xff]   ;;  %v4934_v1 = vld [vmem:[%s5649_s25 + $0x24c] ss:$40 sps:$4 sm:$0xff]  }
  0x4d   : > { %v4931_v0 = vld [vmem:[%s5649_s25 + $0x244] ss:$40 sps:$4 sm:$0xff]   ;;  %v4929_v2 = vld [vmem:[%s5649_s25 + $0x240] ss:$40 sps:$4 sm:$0xff]   ;;  %v4940_v7 = vld [vmem:[%s5649_s25 + $0x74] ss:$40 sps:$4 sm:$0xff]  }
  0x4e   : > { %v4932_v3 = vld [vmem:[%s5649_s25 + $0x248] ss:$40 sps:$4 sm:$0xff]   ;;  %v4937_v5 = vld [vmem:[%s5649_s25 + $0x24] ss:$40 sps:$4 sm:$0xff]   ;;  %v4946_v11 = vld [vmem:[%s5649_s25 + $0x114] ss:$40 sps:$4 sm:$0xff]  }
  0x4f   : > { %1106 = vmatpush1.bf16.msra.mxu0 %v4873_v25  ;;  %1147 = vmatpush1.bf16.msra.mxu1 %v4874_v26  ;;  %v4935_v6 = vld [vmem:[%s5649_s25 + $0x20] ss:$40 sps:$4 sm:$0xff]   ;;  %v4938_v8 = vld [vmem:[%s5649_s25 + $0x70] ss:$40 sps:$4 sm:$0xff]   ;;  %v4943_v9 = vld [vmem:[%s5649_s25 + $0xc4] ss:$40 sps:$4 sm:$0xff]  }
  0x50   : > { %1107 = vmatprep.subr.bf16.mxu0 %v4875_v27  ;;  %1148 = vmatprep.subr.bf16.mxu1 %v4877_v28  ;;  %v4941_v10 = vld [vmem:[%s5649_s25 + $0xc0] ss:$40 sps:$4 sm:$0xff]   ;;  %v4944_v12 = vld [vmem:[%s5649_s25 + $0x110] ss:$40 sps:$4 sm:$0xff]   ;;  %v4949_v13 = vld [vmem:[%s5649_s25 + $0x164] ss:$40 sps:$4 sm:$0xff]  }
  0x51   : > { %v4947_v14 = vld [vmem:[%s5649_s25 + $0x160] ss:$40 sps:$4 sm:$0xff]   ;;  %v4952_v15 = vld [vmem:[%s5649_s25 + $0x1b4] ss:$40 sps:$4 sm:$0xff]   ;;  %v4955_v16 = vld [vmem:[%s5649_s25 + $0x204] ss:$40 sps:$4 sm:$0xff]  }
  0x52   : > { %v4953_v17 = vld [vmem:[%s5649_s25 + $0x200] ss:$40 sps:$4 sm:$0xff]   ;;  %v4958_v18 = vld [vmem:[%s5649_s25 + $0x254] ss:$40 sps:$4 sm:$0xff]   ;;  %v4956_v19 = vld [vmem:[%s5649_s25 + $0x250] ss:$40 sps:$4 sm:$0xff]  }
  0x53   : > { %1108 = vmatpush1.bf16.msra.mxu0 %v4879_v29  ;;  %1149 = vmatpush1.bf16.msra.mxu1 %v4880_v30  ;;  %v5467_v20 = vmov 1966171168   ;;  %v5768_v24 = vshrl.u32 %v1317_v22, 7  ;;  %vm5782_vm1 = vcmp.lt.s32.totalorder %v1317_v22, 256  ;;  %vm5470_vm2 = vmmov (!%p4276_p2), 0   ;;  %s6898_s10 = sld [smem:[#allocation24_spill]] (!%p4276_p2) }
  0x54   : > { %1109 = vmatprep.subr.bf16.mxu0 %v4881_v31  ;;  %1150 = vmatprep.subr.bf16.mxu1 %v4883_v32  ;;  %v1315_v21 = vunpack.c.l.s4 %v5467_v20  ;;  %v4983_v20 = vld [vmem:[%s6844_s3 + $0x1c8] ss:$12 sps:$4 sm:$0xff] (!%p4276_p2)   ;;  %vm3519_vm3 = vcmp.lt.s32.totalorder (!%p4276_p2), %v1317_v22, 320  ;;  %vm3686_vm4 = vcmask (!%p4276_p2), 523264   ;;  %vm3771_vm5 = vcmask (!%p4276_p2), 647168   ;;  %s6900_s21 = sld [smem:[#allocation23_spill]] (!%p4276_p2) }
  0x55   : > { %vm3815_vm6 = vcmask (!%p4276_p2), 654336   ;;  %vm3880_vm7 = vcmask (!%p4276_p2), 1041408   ;;  %vm3860_vm8 = vcmask (!%p4276_p2), 155648   ;;  %vm3876_vm9 = vcmask (!%p4276_p2), 162816  }
  0x56   : > { %v1316_v23 = vunpack.c.0.s8 %v1315_v21  ;;  %v4984_v21 = vld [vmem:[%s6844_s3 + $0x64] ss:$12 sps:$4 sm:$0xff] (!%p4276_p2)   ;;  %vm3924_vm10 = vcmask (!%p4276_p2), 8192  }
  0x57   : > { %1110 = vmatpush1.bf16.msra.mxu0 %v4885_v33  ;;  %1151 = vmatpush1.bf16.msra.mxu1 %v4886_v34 }
  0x58   : > { %1177 = vmatprep.subr.bf16.mxu0 %v4889_v35  ;;  %1218 = vmatprep.subr.bf16.mxu1 %v4892_v36  ;;  %v5771_v27 = vsub.s32 %v1316_v23, %v5768_v24  ;;  %v4986_v23 = vld [vmem:[%s6844_s3 + $0x1e4] ss:$12 sps:$4 sm:$0xff] (!%p4276_p2)  }
  0x5a   : > { %1128 = vmatmul.mubr.bf16.vlgmr.msra.gmra.mrb[0].mxu0 %v5711_v37  ;;  %1169 = vmatmul.mubr.bf16.vlgmr.msra.gmra.mrb[0].mxu1 %v5711_v37 }
  0x5b   : > { %1178 = vmatpush1.bf16.msra.mxu0 %v4887_v38  ;;  %1219 = vmatpush1.bf16.msra.mxu1 %v4890_v39 }
  0x5c   : > { %1179 = vmatprep.subr.bf16.mxu0 %v4895_v40  ;;  %1220 = vmatprep.subr.bf16.mxu1 %v4898_v41 }
  0x5d   : > { %1209 = vmatprep.mubr.bf16.mxu0 %v5466_v4  ;;  %1250 = vmatprep.mubr.bf16.mxu1 %v5466_v4 }
  0x5f   : > { %1180 = vmatpush1.bf16.msra.mxu0 %v4893_v42  ;;  %1221 = vmatpush1.bf16.msra.mxu1 %v4896_v43 }
  0x60   : > { %1181 = vmatprep.subr.bf16.mxu0 %v4901_v44  ;;  %1222 = vmatprep.subr.bf16.mxu1 %v4904_v45 }
  0x63   : > { %1182 = vmatpush1.bf16.msra.mxu0 %v4899_v46  ;;  %1223 = vmatpush1.bf16.msra.mxu1 %v4902_v47 }
  0x64   : > { %1183 = vmatprep.subr.bf16.mxu0 %v4907_v48  ;;  %1224 = vmatprep.subr.bf16.mxu1 %v4910_v49 }
  0x67   : > { %1184 = vmatpush1.bf16.msra.mxu0 %v4905_v50  ;;  %1225 = vmatpush1.bf16.msra.mxu1 %v4908_v51 }
  0x68   : > { %1185 = vmatprep.subr.bf16.mxu0 %v4913_v52  ;;  %1226 = vmatprep.subr.bf16.mxu1 %v4916_v53 }
  0x6b   : > { %1186 = vmatpush1.bf16.msra.mxu0 %v4911_v54  ;;  %1227 = vmatpush1.bf16.msra.mxu1 %v4914_v55  ;;  %v612_v54 = vld [vmem:[#allocation2] sm:$0xff] }
  0x6c   : > { %1187 = vmatprep.subr.bf16.mxu0 %v4919_v56  ;;  %1228 = vmatprep.subr.bf16.mxu1 %v4922_v57 }
  0x6f   : > { %1188 = vmatpush1.bf16.msra.mxu0 %v4917_v58  ;;  %1229 = vmatpush1.bf16.msra.mxu1 %v4920_v59 }
  0x70   : > { %1189 = vmatprep.subr.bf16.mxu0 %v4925_v60  ;;  %1230 = vmatprep.subr.bf16.mxu1 %v4928_v61 }
  0x73   : > { %1190 = vmatpush1.bf16.msra.mxu0 %v4923_v62  ;;  %1231 = vmatpush1.bf16.msra.mxu1 %v4926_v63  ;;  %v613_v63 = vld [vmem:[#allocation2 + $0x8] sm:$0x3] }
  0x74   : > { %1191 = vmatprep.subr.bf16.mxu0 %v4931_v0  ;;  %1232 = vmatprep.subr.bf16.mxu1 %v4934_v1  ;;  %v5078_v1 = vld [vmem:[%s6844_s3 + $0x364] ss:$12 sps:$4 sm:$0xff] (!%p4276_p2)  }
  0x77   : > { %1192 = vmatpush1.bf16.msra.mxu0 %v4929_v2  ;;  %1233 = vmatpush1.bf16.msra.mxu1 %v4932_v3  ;;  %v1390_v3 = vld [vmem:[%s592_s20] sm:$0x1] (!%p4276_p2)  ;;  %s6901_s20 = sld [smem:[#allocation25_spill]] (!%p4276_p2) }
  0x78   : > { %1259 = vmatprep.subr.bf16.mxu0 %v4937_v5  ;;  %v5468_v5 = vmov (!%p4276_p2), 0  }
  0x79   : > { %4959 = vset.pattern.permute.xlu0 (!%p4276_p2), %v5468_v5  ;;  %v5049_v5 = vld [vmem:[%s6844_s3 + $0x2d0] ss:$12 sps:$4 sm:$0xff] (!%p4276_p2)  }
  0x7a   : > { %1210 = vmatmul.mubr.bf16.vlgmr.msra.gmra.mrb[4].mxu0 %v5711_v37  ;;  %1251 = vmatmul.mubr.bf16.vlgmr.msra.gmra.mrb[4].mxu1 %v5711_v37 }
  0x7b   : > { %1260 = vmatpush1.bf16.msra.mxu0 %v4935_v6  ;;  %1291 = vmatprep.mubr.bf16.mxu0 %v5466_v4  ;;  %v4950_v4 = vld [vmem:[%s5649_s25 + $0x1b0] ss:$40 sps:$4 sm:$0xff]  }
  0x7c   : > { %1261 = vmatprep.subr.bf16.mxu0 %v4940_v7  ;;  %v4960_v6 = vld [vmem:[%s6844_s3 + $0x4] ss:$12 sps:$4 sm:$0xff] (!%p4276_p2)   ;;  %1393 = vperm.xlu0 (!%p4276_p2), %4959, %v1390_v3  }
  0x7d   : > { %v4962_v7 = vld [vmem:[%s6844_s3 + $0x184] ss:$12 sps:$4 sm:$0xff] (!%p4276_p2)   ;;  %3084 = vmatprep.subr.bf16.mxu1 (!%p4276_p2), %v4960_v6  ;;  %v5050_v6 = vld [vmem:[%s6844_s3 + $0x16c] ss:$12 sps:$4 sm:$0xff] (!%p4276_p2)  }
  0x7e   : > { %v5048_v3 = vld [vmem:[%s6844_s3 + $0x150] ss:$12 sps:$4 sm:$0xff] (!%p4276_p2)  }
  0x7f   : > { %1262 = vmatpush1.bf16.msra.mxu0 %v4938_v8  ;;  %v4964_v8 = vld [vmem:[%s6844_s3] ss:$12 sps:$4 sm:$0xff] (!%p4276_p2)  }
  0x80   : > { %1263 = vmatprep.subr.bf16.mxu0 %v4943_v9  ;;  %v4965_v9 = vld [vmem:[%s6844_s3 + $0x180] ss:$12 sps:$4 sm:$0xff] (!%p4276_p2)   ;;  %3085 = vmatpush1.bf16.msra.mxu1 (!%p4276_p2), %v4964_v8  ;;  %v5054_v8 = vld [vmem:[%s6844_s3 + $0x168] ss:$12 sps:$4 sm:$0xff] (!%p4276_p2)  }
  0x83   : > { %1264 = vmatpush1.bf16.msra.mxu0 %v4941_v10  ;;  %v4966_v10 = vld [vmem:[%s6844_s3 + $0x1c] ss:$12 sps:$4 sm:$0xff] (!%p4276_p2)  }
  0x84   : > { %1265 = vmatprep.subr.bf16.mxu0 %v4946_v11  ;;  %v4968_v11 = vld [vmem:[%s6844_s3 + $0x19c] ss:$12 sps:$4 sm:$0xff] (!%p4276_p2)   ;;  %3086 = vmatprep.subr.bf16.mxu1 (!%p4276_p2), %v4966_v10 }
  0x85   : > { %v5059_v10 = vld [vmem:[%s6844_s3 + $0xc8] ss:$12 sps:$4 sm:$0xff] (!%p4276_p2)  }
  0x87   : > { %1266 = vmatpush1.bf16.msra.mxu0 %v4944_v12  ;;  %v4970_v12 = vld [vmem:[%s6844_s3 + $0x18] ss:$12 sps:$4 sm:$0xff] (!%p4276_p2)  }
  0x88   : > { %1267 = vmatprep.subr.bf16.mxu0 %v4949_v13  ;;  %v4971_v13 = vld [vmem:[%s6844_s3 + $0x198] ss:$12 sps:$4 sm:$0xff] (!%p4276_p2)   ;;  %3087 = vmatpush1.bf16.msra.mxu1 (!%p4276_p2), %v4970_v12  ;;  %v5993_v12 = vsub.s32 (!%p4276_p2), 0, %v5768_v24 }
  0x8b   : > { %1268 = vmatpush1.bf16.msra.mxu0 %v4947_v14  ;;  %v4972_v14 = vld [vmem:[%s6844_s3 + $0x34] ss:$12 sps:$4 sm:$0xff] (!%p4276_p2)  }
  0x8c   : > { %1269 = vmatprep.subr.bf16.mxu0 %v4952_v15  ;;  %v4974_v15 = vld [vmem:[%s6844_s3 + $0x1b4] ss:$12 sps:$4 sm:$0xff] (!%p4276_p2)   ;;  %3088 = vmatprep.subr.bf16.mxu1 (!%p4276_p2), %v4972_v14 }
  0x8f   : > { %1270 = vmatpush1.bf16.msra.mxu0 %v4950_v4  ;;  %v4976_v4 = vld [vmem:[%s6844_s3 + $0x30] ss:$12 sps:$4 sm:$0xff] (!%p4276_p2)  }
  0x90   : > { %1271 = vmatprep.subr.bf16.mxu0 %v4955_v16  ;;  %v4977_v16 = vld [vmem:[%s6844_s3 + $0x1b0] ss:$12 sps:$4 sm:$0xff] (!%p4276_p2)   ;;  %3089 = vmatpush1.bf16.msra.mxu1 (!%p4276_p2), %v4976_v4  ;;  %v5997_v4 = vsub.s32 (!%p4276_p2), 1, %v5768_v24 }
  0x93   : > { %1272 = vmatpush1.bf16.msra.mxu0 %v4953_v17  ;;  %v4978_v17 = vld [vmem:[%s6844_s3 + $0x4c] ss:$12 sps:$4 sm:$0xff] (!%p4276_p2)  }
  0x94   : > { %1273 = vmatprep.subr.bf16.mxu0 %v4958_v18  ;;  %v4980_v18 = vld [vmem:[%s6844_s3 + $0x1cc] ss:$12 sps:$4 sm:$0xff] (!%p4276_p2)   ;;  %3090 = vmatprep.subr.bf16.mxu1 (!%p4276_p2), %v4978_v17  ;;  %v1417_v17 = vsub.s32 (!%p4276_p2), 2, %v5768_v24 }
  0x97   : > { %1274 = vmatpush1.bf16.msra.mxu0 %v4956_v19  ;;  %v4982_v19 = vld [vmem:[%s6844_s3 + $0x48] ss:$12 sps:$4 sm:$0xff] (!%p4276_p2)  }
  0x98   : > { %3125 = vmatprep.subr.bf16.mxu0 (!%p4276_p2), %v4962_v7  ;;  %3091 = vmatpush1.bf16.msra.mxu1 (!%p4276_p2), %v4982_v19  ;;  %v5052_v7 = vld [vmem:[%s6844_s3 + $0x2ec] ss:$12 sps:$4 sm:$0xff] (!%p4276_p2)   ;;  %v1429_v19 = vsub.s32 (!%p4276_p2), 5, %v5768_v24 }
  0x99   : > { %3092 = vmatprep.subr.bf16.mxu1 (!%p4276_p2), %v4984_v21 }
  0x9a   : > { %1292 = vmatmul.mubr.bf16.vlgmr.msra.gmra.mrb[8].mxu0 %v5711_v37 }
  0x9b   : > { %3126 = vmatpush1.bf16.msra.mxu0 (!%p4276_p2), %v4965_v9  ;;  %v5055_v9 = vld [vmem:[%s6844_s3 + $0x2e8] ss:$12 sps:$4 sm:$0xff] (!%p4276_p2)  }
  0x9c   : > { %3127 = vmatprep.subr.bf16.mxu0 (!%p4276_p2), %v4968_v11  ;;  %v5058_v11 = vld [vmem:[%s6844_s3 + $0x304] ss:$12 sps:$4 sm:$0xff] (!%p4276_p2)  }
  0x9f   : > { %3128 = vmatpush1.bf16.msra.mxu0 (!%p4276_p2), %v4971_v13 }
  0xa0   : > { %3129 = vmatprep.subr.bf16.mxu0 (!%p4276_p2), %v4974_v15 }
  0xa3   : > { %3130 = vmatpush1.bf16.msra.mxu0 (!%p4276_p2), %v4977_v16  ;;  %v1421_v16 = vsub.s32 (!%p4276_p2), 3, %v5768_v24 }
  0xa4   : > { %3131 = vmatprep.subr.bf16.mxu0 (!%p4276_p2), %v4980_v18 }
  0xa7   : > { %3132 = vmatpush1.bf16.msra.mxu0 (!%p4276_p2), %v4983_v20 }
  0xa8   : > { %3133 = vmatprep.subr.bf16.mxu0 (!%p4276_p2), %v4986_v23 }
  0xfb   : > { %v1394_v13 = vpop.permute.xlu0 (!%p4276_p2), %1393 }
  0xfc   : > { %v1399_v14 = vrot.slane (!%p4276_p2), %v1394_v13, %v5993_v12  ;;  %v5108_v13 = vld [vmem:[%s6844_s3 + $0x3f4] ss:$12 sps:$4 sm:$0xff] (!%p4276_p2)  }
  0xfe   : > { %5307 = vrcp.f32 (!%p4276_p2), %v1399_v14  ;;  %v5109_v14 = vld [vmem:[%s6844_s3 + $0x278] ss:$12 sps:$4 sm:$0xff] (!%p4276_p2)  }
 0x108   : > { %v5308_v18 = vpop.eup (!%p4276_p2), %5307 }
 0x12d   : > { %v1129_v25 = vpop.f32.mrb[0].mxu0  ;;  %v1170_v26 = vpop.f32.mrb[0].mxu1 }
 0x12e   : > { %v1131_v28 = vpop.f32.mrb[1].mxu0  ;;  %v1172_v29 = vpop.f32.mrb[1].mxu1 }
 0x12f   : > { %v1310_v30 = vcombine.low %v1129_v25, %v1131_v28  ;;  %v1311_v31 = vcombine.low %v1170_v26, %v1172_v29  ;;  %v1133_v32 = vpop.f32.mrb[2].mxu0  ;;  %v1174_v33 = vpop.f32.mrb[2].mxu1  ;;  %v4988_v25 = vld [vmem:[%s6844_s3 + $0x60] ss:$12 sps:$4 sm:$0xff] (!%p4276_p2)   ;;  %v4990_v28 = vld [vmem:[%s6844_s3 + $0x7c] ss:$12 sps:$4 sm:$0xff] (!%p4276_p2)  }
 0x130   : > { %v1134_v34 = vpop.f32.mrb[3].mxu0  ;;  %v1175_v35 = vpop.f32.mrb[3].mxu1  ;;  %v4989_v26 = vld [vmem:[%s6844_s3 + $0x1e0] ss:$12 sps:$4 sm:$0xff] (!%p4276_p2)   ;;  %v4992_v29 = vld [vmem:[%s6844_s3 + $0x1fc] ss:$12 sps:$4 sm:$0xff] (!%p4276_p2)   ;;  %3093 = vmatpush1.bf16.msra.mxu1 (!%p4276_p2), %v4988_v25 }
 0x131   : > { %v1320_v36 = vrot.slane %v1310_v30, %v5771_v27  ;;  %v1327_v37 = vrot.slane %v1311_v31, %v5771_v27  ;;  %v4994_v30 = vld [vmem:[%s6844_s3 + $0x78] ss:$12 sps:$4 sm:$0xff] (!%p4276_p2)   ;;  %3134 = vmatpush1.bf16.msra.mxu0 (!%p4276_p2), %v4989_v26  ;;  %3094 = vmatprep.subr.bf16.mxu1 (!%p4276_p2), %v4990_v28  ;;  %v4996_v32 = vld [vmem:[%s6844_s3 + $0x94] ss:$12 sps:$4 sm:$0xff] (!%p4276_p2)   ;;  %v5000_v34 = vld [vmem:[%s6844_s3 + $0x90] ss:$12 sps:$4 sm:$0xff] (!%p4276_p2)  }
 0x132   : > { %v4995_v31 = vld [vmem:[%s6844_s3 + $0x1f8] ss:$12 sps:$4 sm:$0xff] (!%p4276_p2)   ;;  %3135 = vmatprep.subr.bf16.mxu0 (!%p4276_p2), %v4992_v29  ;;  %v4998_v33 = vld [vmem:[%s6844_s3 + $0x214] ss:$12 sps:$4 sm:$0xff] (!%p4276_p2)   ;;  %v5001_v35 = vld [vmem:[%s6844_s3 + $0x210] ss:$12 sps:$4 sm:$0xff] (!%p4276_p2)  }
 0x133   : > { %v1342_v38 = vcombine.low %v1320_v36, %v1327_v37  ;;  %v5002_v36 = vld [vmem:[%s6844_s3 + $0xac] ss:$12 sps:$4 sm:$0xff] (!%p4276_p2)  }
 0x134   : > { %3095 = vmatpush1.bf16.msra.mxu1 (!%p4276_p2), %v4994_v30  ;;  %v5004_v37 = vld [vmem:[%s6844_s3 + $0x22c] ss:$12 sps:$4 sm:$0xff] (!%p4276_p2)  }
 0x135   : > { %v1350_v52 = vrot.slane %v1342_v38, %v5771_v27  ;;  %3136 = vmatpush1.bf16.msra.mxu0 (!%p4276_p2), %v4995_v31  ;;  %3096 = vmatprep.subr.bf16.mxu1 (!%p4276_p2), %v4996_v32  ;;  %v5006_v38 = vld [vmem:[%s6844_s3 + $0xa8] ss:$12 sps:$4 sm:$0xff] (!%p4276_p2)   ;;  %v5056_v31 = vld [vmem:[%s6844_s3 + $0x300] ss:$12 sps:$4 sm:$0xff] (!%p4276_p2)  }
 0x136   : > { %3137 = vmatprep.subr.bf16.mxu0 (!%p4276_p2), %v4998_v33 }
 0x138   : > { %3097 = vmatpush1.bf16.msra.mxu1 (!%p4276_p2), %v5000_v34  ;;  %v5060_v34 = vld [vmem:[%s6844_s3 + $0x8] ss:$12 sps:$4 sm:$0xff] (!%p4276_p2)  }
 0x139   : > { %3138 = vmatpush1.bf16.msra.mxu0 (!%p4276_p2), %v5001_v35  ;;  %3098 = vmatprep.subr.bf16.mxu1 (!%p4276_p2), %v5002_v36  ;;  %v5063_v35 = vld [vmem:[%s6844_s3 + $0x31c] ss:$12 sps:$4 sm:$0xff] (!%p4276_p2)   ;;  %v5061_v36 = vld [vmem:[%s6844_s3 + $0x318] ss:$12 sps:$4 sm:$0xff] (!%p4276_p2)  }
 0x13a   : > { %3139 = vmatprep.subr.bf16.mxu0 (!%p4276_p2), %v5004_v37  ;;  %v5064_v37 = vld [vmem:[%s6844_s3 + $0xe0] ss:$12 sps:$4 sm:$0xff] (!%p4276_p2)  }
 0x13c   : > { %3099 = vmatpush1.bf16.msra.mxu1 (!%p4276_p2), %v5006_v38 }
 0x14d   : > { %v1211_v39 = vpop.f32.mrb[4].mxu0  ;;  %v1252_v40 = vpop.f32.mrb[4].mxu1 }
 0x14e   : > { %v1213_v41 = vpop.f32.mrb[5].mxu0  ;;  %v1254_v42 = vpop.f32.mrb[5].mxu1 }
 0x14f   : > { %v1312_v43 = vcombine.low %v1211_v39, %v1213_v41  ;;  %v1313_v44 = vcombine.low %v1252_v40, %v1254_v42  ;;  %v1215_v45 = vpop.f32.mrb[6].mxu0  ;;  %v1256_v46 = vpop.f32.mrb[6].mxu1  ;;  %v5007_v39 = vld [vmem:[%s6844_s3 + $0x228] ss:$12 sps:$4 sm:$0xff] (!%p4276_p2)   ;;  %v5008_v40 = vld [vmem:[%s6844_s3 + $0xc4] ss:$12 sps:$4 sm:$0xff] (!%p4276_p2)  }
 0x150   : > { %v1216_v47 = vpop.f32.mrb[7].mxu0  ;;  %v1257_v48 = vpop.f32.mrb[7].mxu1  ;;  %v5010_v41 = vld [vmem:[%s6844_s3 + $0x244] ss:$12 sps:$4 sm:$0xff] (!%p4276_p2)   ;;  %v5012_v42 = vld [vmem:[%s6844_s3 + $0xc0] ss:$12 sps:$4 sm:$0xff] (!%p4276_p2)   ;;  %3140 = vmatpush1.bf16.msra.mxu0 (!%p4276_p2), %v5007_v39  ;;  %3100 = vmatprep.subr.bf16.mxu1 (!%p4276_p2), %v5008_v40 }
 0x151   : > { %v1334_v49 = vrot.slane %v1312_v43, %v5771_v27  ;;  %v1341_v50 = vrot.slane %v1313_v44, %v5771_v27  ;;  %v5013_v43 = vld [vmem:[%s6844_s3 + $0x240] ss:$12 sps:$4 sm:$0xff] (!%p4276_p2)   ;;  %v5014_v44 = vld [vmem:[%s6844_s3 + $0xdc] ss:$12 sps:$4 sm:$0xff] (!%p4276_p2)   ;;  %3141 = vmatprep.subr.bf16.mxu0 (!%p4276_p2), %v5010_v41  ;;  %3101 = vmatpush1.bf16.msra.mxu1 (!%p4276_p2), %v5012_v42  ;;  %v5018_v46 = vld [vmem:[%s6844_s3 + $0xd8] ss:$12 sps:$4 sm:$0xff] (!%p4276_p2)  }
 0x152   : > { %v5016_v45 = vld [vmem:[%s6844_s3 + $0x25c] ss:$12 sps:$4 sm:$0xff] (!%p4276_p2)   ;;  %3102 = vmatprep.subr.bf16.mxu1 (!%p4276_p2), %v5014_v44  ;;  %v5019_v47 = vld [vmem:[%s6844_s3 + $0x258] ss:$12 sps:$4 sm:$0xff] (!%p4276_p2)   ;;  %v5020_v48 = vld [vmem:[%s6844_s3 + $0xf4] ss:$12 sps:$4 sm:$0xff] (!%p4276_p2)  }
 0x153   : > { %v1343_v51 = vcombine.low %v1334_v49, %v1341_v50  ;;  %v5022_v49 = vld [vmem:[%s6844_s3 + $0x274] ss:$12 sps:$4 sm:$0xff] (!%p4276_p2)   ;;  %v5024_v50 = vld [vmem:[%s6844_s3 + $0xf0] ss:$12 sps:$4 sm:$0xff] (!%p4276_p2)   ;;  %v5069_v41 = vld [vmem:[%s6844_s3 + $0xf8] ss:$12 sps:$4 sm:$0xff] (!%p4276_p2)  }
 0x154   : > { %3142 = vmatpush1.bf16.msra.mxu0 (!%p4276_p2), %v5013_v43  ;;  %v5065_v39 = vld [vmem:[%s6844_s3 + $0x20] ss:$12 sps:$4 sm:$0xff] (!%p4276_p2)   ;;  %v5066_v44 = vld [vmem:[%s6844_s3 + $0x330] ss:$12 sps:$4 sm:$0xff] (!%p4276_p2)  }
 0x155   : > { %v1357_v53 = vrot.slane %v1343_v51, %v5771_v27  ;;  %3143 = vmatprep.subr.bf16.mxu0 (!%p4276_p2), %v5016_v45  ;;  %3103 = vmatpush1.bf16.msra.mxu1 (!%p4276_p2), %v5018_v46  ;;  %v5025_v51 = vld [vmem:[%s6844_s3 + $0x270] ss:$12 sps:$4 sm:$0xff] (!%p4276_p2)   ;;  %v5068_v40 = vld [vmem:[%s6844_s3 + $0x334] ss:$12 sps:$4 sm:$0xff] (!%p4276_p2)   ;;  %v5070_v45 = vld [vmem:[%s6844_s3 + $0x38] ss:$12 sps:$4 sm:$0xff] (!%p4276_p2)  }
 0x156   : > { %3104 = vmatprep.subr.bf16.mxu1 (!%p4276_p2), %v5020_v48  ;;  %v5073_v46 = vld [vmem:[%s6844_s3 + $0x34c] ss:$12 sps:$4 sm:$0xff] (!%p4276_p2)   ;;  %v5071_v48 = vld [vmem:[%s6844_s3 + $0x348] ss:$12 sps:$4 sm:$0xff] (!%p4276_p2)  }
 0x157   : > { %v1358_v55 = vcombine.low %v1350_v52, %v1357_v53  ;;  %v5026_v52 = vld [vmem:[%s6844_s3 + $0x10c] ss:$12 sps:$4 sm:$0xff] (!%p4276_p2)  }
 0x158   : > { %3144 = vmatpush1.bf16.msra.mxu0 (!%p4276_p2), %v5019_v47  ;;  %v5028_v53 = vld [vmem:[%s6844_s3 + $0x28c] ss:$12 sps:$4 sm:$0xff] (!%p4276_p2)   ;;  %v5074_v47 = vld [vmem:[%s6844_s3 + $0x110] ss:$12 sps:$4 sm:$0xff] (!%p4276_p2)  }
 0x159   : > { %v1376_v56 = vadd.f32 %v1358_v55, %v612_v54  ;;  %3145 = vmatprep.subr.bf16.mxu0 (!%p4276_p2), %v5022_v49  ;;  %3105 = vmatpush1.bf16.msra.mxu1 (!%p4276_p2), %v5024_v50  ;;  %v5030_v54 = vld [vmem:[%s6844_s3 + $0x108] ss:$12 sps:$4 sm:$0xff] (!%p4276_p2)   ;;  %v5075_v49 = vld [vmem:[%s6844_s3 + $0x50] ss:$12 sps:$4 sm:$0xff] (!%p4276_p2)  }
 0x15a   : > { %v5031_v55 = vld [vmem:[%s6844_s3 + $0x288] ss:$12 sps:$4 sm:$0xff] (!%p4276_p2)   ;;  %3106 = vmatprep.subr.bf16.mxu1 (!%p4276_p2), %v5026_v52 }
 0x15b   : > { %1378 = vst [vmem:[#allocation2] sm:$0xff] %v1376_v56  ;;  %v5032_v56 = vld [vmem:[%s6844_s3 + $0x124] ss:$12 sps:$4 sm:$0xff] (!%p4276_p2)   ;;  %v5079_v50 = vld [vmem:[%s6844_s3 + $0x128] ss:$12 sps:$4 sm:$0xff] (!%p4276_p2)  }
 0x15c   : > { %3146 = vmatpush1.bf16.msra.mxu0 (!%p4276_p2), %v5025_v51  ;;  %v5076_v51 = vld [vmem:[%s6844_s3 + $0x360] ss:$12 sps:$4 sm:$0xff] (!%p4276_p2)   ;;  %v5080_v52 = vld [vmem:[%s6844_s3 + $0x68] ss:$12 sps:$4 sm:$0xff] (!%p4276_p2)  }
 0x15d   : > { %3147 = vmatprep.subr.bf16.mxu0 (!%p4276_p2), %v5028_v53  ;;  %3107 = vmatpush1.bf16.msra.mxu1 (!%p4276_p2), %v5030_v54  ;;  %v5083_v53 = vld [vmem:[%s6844_s3 + $0x37c] ss:$12 sps:$4 sm:$0xff] (!%p4276_p2)   ;;  %v5084_v54 = vld [vmem:[%s6844_s3 + $0x140] ss:$12 sps:$4 sm:$0xff] (!%p4276_p2)  }
 0x15e   : > { %3108 = vmatprep.subr.bf16.mxu1 (!%p4276_p2), %v5032_v56  ;;  %v5085_v56 = vld [vmem:[%s6844_s3 + $0x80] ss:$12 sps:$4 sm:$0xff] (!%p4276_p2)  }
 0x160   : > { %3148 = vmatpush1.bf16.msra.mxu0 (!%p4276_p2), %v5031_v55  ;;  %v5081_v55 = vld [vmem:[%s6844_s3 + $0x378] ss:$12 sps:$4 sm:$0xff] (!%p4276_p2)  }
 0x162   : > { %v1388_v15 = vld [vmem:[#allocation2] sm:$0xff] (!%p4276_p2) }
 0x163   : > { %v6002_v20 = vmul.f32 (!%p4276_p2), %v5308_v18, %v1388_v15  ;;  %v5106_v15 = vld [vmem:[%s6844_s3 + $0x3f0] ss:$12 sps:$4 sm:$0xff] (!%p4276_p2)  }
 0x165   : > { %1403 = vst [vmem:[%s5658_s24] sm:$0xff] (!%p4276_p2), %v6002_v20  ;;  %v1414_v21 = vrot.slane (!%p4276_p2), %v6002_v20, %v5997_v4  ;;  %v1422_v23 = vrot.slane (!%p4276_p2), %v6002_v20, %v1421_v16  ;;  %v1410_v25 = vrot.slane (!%p4276_p2), %v6002_v20, %v5993_v12  ;;  %v1418_v26 = vrot.slane (!%p4276_p2), %v6002_v20, %v1417_v17  ;;  %v5110_v16 = vld [vmem:[%s6844_s3 + $0x1b8] ss:$12 sps:$4 sm:$0xff] (!%p4276_p2)  }
 0x166   : > { %v1430_v28 = vrot.slane (!%p4276_p2), %v6002_v20, %v1429_v19  ;;  %v5114_v19 = vld [vmem:[%s6844_s3 + $0x290] ss:$12 sps:$4 sm:$0xff] (!%p4276_p2)  }
 0x167   : > { %v1458_v29 = vpack.c.bf16 (!%p4276_p2), %v1414_v21, %v1414_v21  ;;  %v6015_v30 = vpack.c.bf16 (!%p4276_p2), %v1422_v23, %v1422_v23  ;;  %v6020_v32 = vpack.c.bf16 (!%p4276_p2), %v1410_v25, %v1410_v25  ;;  %v6022_v33 = vpack.c.bf16 (!%p4276_p2), %v1418_v26, %v1418_v26  ;;  %v5111_v21 = vld [vmem:[%s6844_s3 + $0x408] ss:$12 sps:$4 sm:$0xff] (!%p4276_p2)   ;;  %v5115_v23 = vld [vmem:[%s6844_s3 + $0x1d0] ss:$12 sps:$4 sm:$0xff] (!%p4276_p2)  }
 0x168   : > { %v6039_v38 = vpack.c.bf16 (!%p4276_p2), %v1430_v28, %v1430_v28  ;;  %v5118_v25 = vld [vmem:[%s6844_s3 + $0x424] ss:$12 sps:$4 sm:$0xff] (!%p4276_p2)   ;;  %v5119_v26 = vld [vmem:[%s6844_s3 + $0x2a8] ss:$12 sps:$4 sm:$0xff] (!%p4276_p2)   ;;  %v5116_v28 = vld [vmem:[%s6844_s3 + $0x420] ss:$12 sps:$4 sm:$0xff] (!%p4276_p2)  }
 0x169   : > { %3116 = vmatprep.mubr.bf16.mxu1 (!%p4276_p2), %v1458_v29  ;;  %3157 = vmatprep.mubr.bf16.mxu0 (!%p4276_p2), %v6015_v30 }
 0x16d   : > { %v1293_v57 = vpop.f32.mrb[8].mxu0 }
 0x16e   : > { %v1295_v58 = vpop.f32.mrb[9].mxu0 }
 0x16f   : > { %v1359_v59 = vcombine.low %v1293_v57, %v1295_v58  ;;  %v1297_v60 = vpop.f32.mrb[10].mxu0  ;;  %v5034_v57 = vld [vmem:[%s6844_s3 + $0x2a4] ss:$12 sps:$4 sm:$0xff] (!%p4276_p2)   ;;  %v5036_v58 = vld [vmem:[%s6844_s3 + $0x120] ss:$12 sps:$4 sm:$0xff] (!%p4276_p2)  }
 0x170   : > { %v1298_v61 = vpop.f32.mrb[11].mxu0  ;;  %v5038_v60 = vld [vmem:[%s6844_s3 + $0x13c] ss:$12 sps:$4 sm:$0xff] (!%p4276_p2)   ;;  %3149 = vmatprep.subr.bf16.mxu0 (!%p4276_p2), %v5034_v57  ;;  %3109 = vmatpush1.bf16.msra.mxu1 (!%p4276_p2), %v5036_v58  ;;  %v5088_v57 = vld [vmem:[%s6844_s3 + $0x394] ss:$12 sps:$4 sm:$0xff] (!%p4276_p2)  }
 0x171   : > { %v1366_v62 = vrot.slane %v1359_v59, %v5771_v27  ;;  %1387 = sbr.rel (%p4276_p2) target bundleno = 1464 (0x5b8), region = 72  ;;  %v5037_v59 = vld [vmem:[%s6844_s3 + $0x2a0] ss:$12 sps:$4 sm:$0xff] (!%p4276_p2)   ;;  %v5040_v61 = vld [vmem:[%s6844_s3 + $0x2bc] ss:$12 sps:$4 sm:$0xff] (!%p4276_p2)   ;;  %3110 = vmatprep.subr.bf16.mxu1 (!%p4276_p2), %v5038_v60 }
 0x172   : > { %3150 = vmatpush1.bf16.msra.mxu0 (!%p4276_p2), %v5037_v59  ;;  %v5089_v58 = vld [vmem:[%s6844_s3 + $0x158] ss:$12 sps:$4 sm:$0xff] (!%p4276_p2)   ;;  %v5086_v59 = vld [vmem:[%s6844_s3 + $0x390] ss:$12 sps:$4 sm:$0xff] (!%p4276_p2)  }
 0x173   : > { %v1373_v0 = vrot.slane %v1366_v62, %v5771_v27  ;;  %v5042_v62 = vld [vmem:[%s6844_s3 + $0x138] ss:$12 sps:$4 sm:$0xff] (!%p4276_p2)   ;;  %3151 = vmatprep.subr.bf16.mxu0 (!%p4276_p2), %v5040_v61 }
 0x174   : > { %3111 = vmatpush1.bf16.msra.mxu1 (!%p4276_p2), %v5042_v62  ;;  %v5090_v60 = vld [vmem:[%s6844_s3 + $0x98] ss:$12 sps:$4 sm:$0xff] (!%p4276_p2)   ;;  %v5094_v62 = vld [vmem:[%s6844_s3 + $0x170] ss:$12 sps:$4 sm:$0xff] (!%p4276_p2)  }
 0x175   : > { %v1377_v2 = vadd.f32 %v1373_v0, %v613_v63  ;;  %v5043_v63 = vld [vmem:[%s6844_s3 + $0x2b8] ss:$12 sps:$4 sm:$0xff] (!%p4276_p2)   ;;  %v5044_v0 = vld [vmem:[%s6844_s3 + $0x154] ss:$12 sps:$4 sm:$0xff] (!%p4276_p2)  }
 0x176   : > { %3152 = vmatpush1.bf16.msra.mxu0 (!%p4276_p2), %v5043_v63  ;;  %3112 = vmatprep.subr.bf16.mxu1 (!%p4276_p2), %v5044_v0  ;;  %v5093_v61 = vld [vmem:[%s6844_s3 + $0x3ac] ss:$12 sps:$4 sm:$0xff] (!%p4276_p2)   ;;  %v5091_v63 = vld [vmem:[%s6844_s3 + $0x3a8] ss:$12 sps:$4 sm:$0xff] (!%p4276_p2)   ;;  %v5095_v0 = vld [vmem:[%s6844_s3 + $0xb0] ss:$12 sps:$4 sm:$0xff] (!%p4276_p2)  }
 0x177   : > { %1383 = vst.msk [vmem:[#allocation2 + $0x8] sm:$0x3] %vm5782_vm1, %v1377_v2  ;;  %v5046_v2 = vld [vmem:[%s6844_s3 + $0x2d4] ss:$12 sps:$4 sm:$0xff] (!%p4276_p2)  }
 0x178   : > { %3153 = vmatprep.subr.bf16.mxu0 %v5046_v2  ;;  %3113 = vmatpush1.bf16.msra.mxu1 %v5048_v3  ;;  %v5098_v2 = vld [vmem:[%s6844_s3 + $0x3c4] ss:$12 sps:$4 sm:$0xff]   ;;  %v5099_v3 = vld [vmem:[%s6844_s3 + $0x248] ss:$12 sps:$4 sm:$0xff]  }
 0x179   : > { %3114 = vmatprep.subr.bf16.mxu1 %v5050_v6  ;;  %v5100_v6 = vld [vmem:[%s6844_s3 + $0x188] ss:$12 sps:$4 sm:$0xff]  }
 0x17a   : > { %3154 = vmatpush1.bf16.msra.mxu0 %v5049_v5  ;;  %v5096_v5 = vld [vmem:[%s6844_s3 + $0x3c0] ss:$12 sps:$4 sm:$0xff]  }
 0x17b   : > { %3155 = vmatprep.subr.bf16.mxu0 %v5052_v7  ;;  %v5103_v7 = vld [vmem:[%s6844_s3 + $0x3dc] ss:$12 sps:$4 sm:$0xff]  }
 0x17c   : > { %3115 = vmatpush1.bf16.msra.mxu1 %v5054_v8  ;;  %v5104_v8 = vld [vmem:[%s6844_s3 + $0x260] ss:$12 sps:$4 sm:$0xff]  }
 0x17d   : > { %4552 = vmatprep.subr.bf16.mxu1 %v5059_v10  ;;  %v5105_v10 = vld [vmem:[%s6844_s3 + $0x1a0] ss:$12 sps:$4 sm:$0xff]  }
 0x17e   : > { %3156 = vmatpush1.bf16.msra.mxu0 %v5055_v9  ;;  %v1389_v42 = vld [vmem:[#allocation2 + $0x8] sm:$0x3]  ;;  %v5101_v9 = vld [vmem:[%s6844_s3 + $0x3d8] ss:$12 sps:$4 sm:$0xff]  }
 0x17f   : > { %3166 = vmatprep.subr.bf16.mxu0 %v5058_v11  ;;  %3117 = vmatmul.mubr.bf16.vlgmr.msra.gmra.mrb[0].mxu1 %v6020_v32  ;;  %v6051_v43 = vmul.f32 %v5308_v18, %v1389_v42  ;;  %v1425_v11 = vsub.s32 4, %v5768_v24  ;;  %v5113_v18 = vld [vmem:[%s6844_s3 + $0x40c] ss:$12 sps:$4 sm:$0xff]   ;;  %v1437_v42 = vsub.s32 7, %v5768_v24 }
 0x180   : > { %4553 = vmatpush3.bf16.msra.mxu1 %v5060_v34  ;;  %3321 = vmatprep.mubr.bf16.mxu1 %v1458_v29  ;;  %v5120_v29 = vld [vmem:[%s6844_s3 + $0x1e8] ss:$12 sps:$4 sm:$0xff]   ;;  %v5125_v34 = vld [vmem:[%s6844_s3 + $0x200] ss:$12 sps:$4 sm:$0xff]  }
 0x181   : > { %3158 = vmatmul.mubr.bf16.vlgmr.msra.gmra.mrb[0].mxu0 %v6022_v33  ;;  %4554 = vmatprep.subr.bf16.mxu1 %v5064_v37  ;;  %1404 = vst.msk [vmem:[%s5658_s24 + $0x8] sm:$0x3] %vm5782_vm1, %v6051_v43  ;;  %v5126_v37 = vld [vmem:[%s6844_s3 + $0x450] ss:$12 sps:$4 sm:$0xff]   ;;  %s6899_s24 = sld [smem:[#allocation22_spill]] }
 0x182   : > { %3167 = vmatpush1.bf16.msra.mxu0 %v5056_v31  ;;  %3198 = vmatprep.mubr.bf16.mxu0 %v6039_v38  ;;  %v5124_v31 = vld [vmem:[%s6844_s3 + $0x2c0] ss:$12 sps:$4 sm:$0xff]  }
 0x183   : > { %3168 = vmatprep.subr.bf16.mxu0 %v5063_v35  ;;  %v5128_v35 = vld [vmem:[%s6844_s3 + $0x454] ss:$12 sps:$4 sm:$0xff]  }
 0x184   : > { %4555 = vmatpush3.bf16.msra.mxu1 %v5065_v39  ;;  %v5130_v39 = vld [vmem:[%s6844_s3 + $0x218] ss:$12 sps:$4 sm:$0xff]  }
 0x185   : > { %4556 = vmatprep.subr.bf16.mxu1 %v5069_v41  ;;  %v5134_v41 = vld [vmem:[%s6844_s3 + $0x2f0] ss:$12 sps:$4 sm:$0xff]  }
 0x186   : > { %3169 = vmatpush1.bf16.msra.mxu0 %v5061_v36  ;;  %v5129_v36 = vld [vmem:[%s6844_s3 + $0x2d8] ss:$12 sps:$4 sm:$0xff]  }
 0x187   : > { %3170 = vmatprep.subr.bf16.mxu0 %v5068_v40  ;;  %v5133_v40 = vld [vmem:[%s6844_s3 + $0x46c] ss:$12 sps:$4 sm:$0xff]  }
 0x188   : > { %4557 = vmatpush3.bf16.msra.mxu1 %v5070_v45  ;;  %v5135_v45 = vld [vmem:[%s6844_s3 + $0x230] ss:$12 sps:$4 sm:$0xff]  }
 0x189   : > { %4558 = vmatprep.subr.bf16.mxu1 %v5074_v47  ;;  %v5138_v47 = vld [vmem:[%s6844_s3 + $0x484] ss:$12 sps:$4 sm:$0xff]  }
 0x18a   : > { %3171 = vmatpush1.bf16.msra.mxu0 %v5066_v44  ;;  %v5131_v44 = vld [vmem:[%s6844_s3 + $0x468] ss:$12 sps:$4 sm:$0xff]  }
 0x18b   : > { %3172 = vmatprep.subr.bf16.mxu0 %v5073_v46  ;;  %v1426_v46 = vrot.slane %v6002_v20, %v1425_v11  ;;  %v5166_v11 = vld [vmem:[%s6844_s3 + $0x510] ss:$12 sps:$4 sm:$0xff]  }
 0x18c   : > { %4559 = vmatpush3.bf16.msra.mxu1 %v5075_v49  ;;  %v1438_v49 = vrot.slane %v6002_v20, %v1437_v42  ;;  %v5199_v42 = vld [vmem:[%s6844_s3 + $0x5a8] ss:$12 sps:$4 sm:$0xff]  }
 0x18d   : > { %4560 = vmatprep.subr.bf16.mxu1 %v5079_v50  ;;  %v6234_v50 = vpack.c.bf16 %v1426_v46, %v1426_v46  ;;  %v5203_v46 = vld [vmem:[%s6844_s3 + $0x5bc] ss:$12 sps:$4 sm:$0xff]  }
 0x18e   : > { %3173 = vmatpush1.bf16.msra.mxu0 %v5071_v48  ;;  %v5139_v48 = vld [vmem:[%s6844_s3 + $0x3c8] ss:$12 sps:$4 sm:$0xff]  }
 0x18f   : > { %3174 = vmatprep.subr.bf16.mxu0 %v5078_v1  ;;  %v5136_v1 = vld [vmem:[%s6844_s3 + $0x480] ss:$12 sps:$4 sm:$0xff]  }
 0x190   : > { %4561 = vmatpush3.bf16.msra.mxu1 %v5080_v52  ;;  %v6239_v52 = vpack.c.bf16 %v1438_v49, %v1438_v49  ;;  %v5205_v49 = vld [vmem:[%s6844_s3 + $0x500] ss:$12 sps:$4 sm:$0xff]  }
 0x191   : > { %4562 = vmatprep.subr.bf16.mxu1 %v5084_v54  ;;  %v5144_v54 = vld [vmem:[%s6844_s3 + $0x3e0] ss:$12 sps:$4 sm:$0xff]  }
 0x192   : > { %3175 = vmatpush1.bf16.msra.mxu0 %v5076_v51  ;;  %v5140_v51 = vld [vmem:[%s6844_s3 + $0x308] ss:$12 sps:$4 sm:$0xff]  }
 0x193   : > { %3176 = vmatprep.subr.bf16.mxu0 %v5083_v53  ;;  %v5143_v53 = vld [vmem:[%s6844_s3 + $0x49c] ss:$12 sps:$4 sm:$0xff]  }
 0x194   : > { %4563 = vmatpush3.bf16.msra.mxu1 %v5085_v56  ;;  %v5145_v56 = vld [vmem:[%s6844_s3 + $0x320] ss:$12 sps:$4 sm:$0xff]  }
 0x195   : > { %4564 = vmatprep.subr.bf16.mxu1 %v5089_v58  ;;  %v5146_v58 = vld [vmem:[%s6844_s3 + $0x4b0] ss:$12 sps:$4 sm:$0xff]  }
 0x196   : > { %3177 = vmatpush1.bf16.msra.mxu0 %v5081_v55  ;;  %v5141_v55 = vld [vmem:[%s6844_s3 + $0x498] ss:$12 sps:$4 sm:$0xff]  }
 0x197   : > { %3178 = vmatprep.subr.bf16.mxu0 %v5088_v57  ;;  %v5148_v57 = vld [vmem:[%s6844_s3 + $0x4b4] ss:$12 sps:$4 sm:$0xff]  }
 0x198   : > { %4565 = vmatpush3.bf16.msra.mxu1 %v5090_v60  ;;  %v5154_v60 = vld [vmem:[%s6844_s3 + $0x410] ss:$12 sps:$4 sm:$0xff]  }
 0x199   : > { %4566 = vmatprep.subr.bf16.mxu1 %v5094_v62  ;;  %v5155_v62 = vld [vmem:[%s6844_s3 + $0x350] ss:$12 sps:$4 sm:$0xff]  }
 0x19a   : > { %3179 = vmatpush1.bf16.msra.mxu0 %v5086_v59  ;;  %v5153_v59 = vld [vmem:[%s6844_s3 + $0x4cc] ss:$12 sps:$4 sm:$0xff]  }
 0x19b   : > { %3180 = vmatprep.subr.bf16.mxu0 %v5093_v61  ;;  %v5151_v61 = vld [vmem:[%s6844_s3 + $0x4c8] ss:$12 sps:$4 sm:$0xff]  }
 0x19c   : > { %4567 = vmatpush3.bf16.msra.mxu1 %v5095_v0  ;;  %v5159_v0 = vld [vmem:[%s6844_s3 + $0x428] ss:$12 sps:$4 sm:$0xff]  }
 0x19d   : > { %4574 = vmatprep.subr.bf16.mxu1 %v5099_v3  ;;  %v5160_v3 = vld [vmem:[%s6844_s3 + $0x368] ss:$12 sps:$4 sm:$0xff]  }
 0x19e   : > { %3181 = vmatpush1.bf16.msra.mxu0 %v5091_v63  ;;  %v5158_v63 = vld [vmem:[%s6844_s3 + $0x4e4] ss:$12 sps:$4 sm:$0xff]  }
 0x19f   : > { %3182 = vmatprep.subr.bf16.mxu0 %v5098_v2  ;;  %3322 = vmatmul.mubr.bf16.vlgmr.msra.gmra.mrb[4].mxu1 %v6020_v32  ;;  %v5121_v32 = vld [vmem:[%s6844_s3 + $0x438] ss:$12 sps:$4 sm:$0xff]   ;;  %v5156_v2 = vld [vmem:[%s6844_s3 + $0x4e0] ss:$12 sps:$4 sm:$0xff]  }
 0x1a0   : > { %4575 = vmatpush3.bf16.msra.mxu1 %v5100_v6  ;;  %3361 = vmatprep.mubr.bf16.mxu1 %v6015_v30  ;;  %v5123_v30 = vld [vmem:[%s6844_s3 + $0x43c] ss:$12 sps:$4 sm:$0xff]   ;;  %v5164_v6 = vld [vmem:[%s6844_s3 + $0x440] ss:$12 sps:$4 sm:$0xff]  }
 0x1a1   : > { %4576 = vmatprep.subr.bf16.mxu1 %v5104_v8  ;;  %v5165_v8 = vld [vmem:[%s6844_s3 + $0x380] ss:$12 sps:$4 sm:$0xff]  }
 0x1a2   : > { %3183 = vmatpush1.bf16.msra.mxu0 %v5096_v5  ;;  %v5163_v5 = vld [vmem:[%s6844_s3 + $0x4fc] ss:$12 sps:$4 sm:$0xff]  }
 0x1a3   : > { %3184 = vmatprep.subr.bf16.mxu0 %v5103_v7  ;;  %v5161_v7 = vld [vmem:[%s6844_s3 + $0x4f8] ss:$12 sps:$4 sm:$0xff]  }
 0x1a4   : > { %4577 = vmatpush3.bf16.msra.mxu1 %v5105_v10  ;;  %v5169_v10 = vld [vmem:[%s6844_s3 + $0x458] ss:$12 sps:$4 sm:$0xff]  }
 0x1a5   : > { %4578 = vmatprep.subr.bf16.mxu1 %v5109_v14  ;;  %v5173_v14 = vld [vmem:[%s6844_s3 + $0x52c] ss:$12 sps:$4 sm:$0xff]  }
 0x1a6   : > { %3185 = vmatpush1.bf16.msra.mxu0 %v5101_v9  ;;  %v5168_v9 = vld [vmem:[%s6844_s3 + $0x514] ss:$12 sps:$4 sm:$0xff]  }
 0x1a7   : > { %3186 = vmatprep.subr.bf16.mxu0 %v5108_v13  ;;  %v5170_v13 = vld [vmem:[%s6844_s3 + $0x398] ss:$12 sps:$4 sm:$0xff]  }
 0x1a8   : > { %4579 = vmatpush3.bf16.msra.mxu1 %v5110_v16  ;;  %v5171_v16 = vld [vmem:[%s6844_s3 + $0x528] ss:$12 sps:$4 sm:$0xff]  }
 0x1a9   : > { %4580 = vmatprep.subr.bf16.mxu1 %v5114_v19  ;;  %v5178_v19 = vld [vmem:[%s6844_s3 + $0x544] ss:$12 sps:$4 sm:$0xff]  }
 0x1aa   : > { %3187 = vmatpush1.bf16.msra.mxu0 %v5106_v15  ;;  %v5174_v15 = vld [vmem:[%s6844_s3 + $0x470] ss:$12 sps:$4 sm:$0xff]  }
 0x1ab   : > { %3188 = vmatprep.subr.bf16.mxu0 %v5113_v18  ;;  %v5175_v18 = vld [vmem:[%s6844_s3 + $0x3b0] ss:$12 sps:$4 sm:$0xff]  }
 0x1ac   : > { %4581 = vmatpush3.bf16.msra.mxu1 %v5115_v23  ;;  %v5176_v23 = vld [vmem:[%s6844_s3 + $0x540] ss:$12 sps:$4 sm:$0xff]  }
 0x1ad   : > { %4582 = vmatprep.subr.bf16.mxu1 %v5119_v26  ;;  %v5183_v26 = vld [vmem:[%s6844_s3 + $0x55c] ss:$12 sps:$4 sm:$0xff]  }
 0x1ae   : > { %3189 = vmatpush1.bf16.msra.mxu0 %v5111_v21  ;;  %v5179_v21 = vld [vmem:[%s6844_s3 + $0x548] ss:$12 sps:$4 sm:$0xff]  }
 0x1af   : > { %3190 = vmatprep.subr.bf16.mxu0 %v5118_v25  ;;  %v5180_v25 = vld [vmem:[%s6844_s3 + $0x488] ss:$12 sps:$4 sm:$0xff]  }
 0x1b0   : > { %4583 = vmatpush3.bf16.msra.mxu1 %v5120_v29  ;;  %v5181_v29 = vld [vmem:[%s6844_s3 + $0x558] ss:$12 sps:$4 sm:$0xff]  }
 0x1b1   : > { %4584 = vmatprep.subr.bf16.mxu1 %v5124_v31  ;;  %v5188_v31 = vld [vmem:[%s6844_s3 + $0x574] ss:$12 sps:$4 sm:$0xff]  }
 0x1b2   : > { %3191 = vmatpush1.bf16.msra.mxu0 %v5116_v28  ;;  %v5184_v28 = vld [vmem:[%s6844_s3 + $0x560] ss:$12 sps:$4 sm:$0xff]  }
 0x1b3   : > { %3192 = vmatprep.subr.bf16.mxu0 %v5123_v30  ;;  %v5185_v30 = vld [vmem:[%s6844_s3 + $0x4a0] ss:$12 sps:$4 sm:$0xff]  }
 0x1b4   : > { %4585 = vmatpush3.bf16.msra.mxu1 %v5125_v34  ;;  %v5186_v34 = vld [vmem:[%s6844_s3 + $0x570] ss:$12 sps:$4 sm:$0xff]  }
 0x1b5   : > { %4586 = vmatprep.subr.bf16.mxu1 %v5129_v36  ;;  %v5193_v36 = vld [vmem:[%s6844_s3 + $0x58c] ss:$12 sps:$4 sm:$0xff]  }
 0x1b6   : > { %3193 = vmatpush1.bf16.msra.mxu0 %v5121_v32  ;;  %v5189_v32 = vld [vmem:[%s6844_s3 + $0x578] ss:$12 sps:$4 sm:$0xff]  }
 0x1b7   : > { %3194 = vmatprep.subr.bf16.mxu0 %v5128_v35  ;;  %v5190_v35 = vld [vmem:[%s6844_s3 + $0x4b8] ss:$12 sps:$4 sm:$0xff]  }
 0x1b8   : > { %4587 = vmatpush3.bf16.msra.mxu1 %v5130_v39  ;;  %v5191_v39 = vld [vmem:[%s6844_s3 + $0x588] ss:$12 sps:$4 sm:$0xff]  }
 0x1b9   : > { %4588 = vmatprep.subr.bf16.mxu1 %v5134_v41  ;;  %v5198_v41 = vld [vmem:[%s6844_s3 + $0x5a4] ss:$12 sps:$4 sm:$0xff]  }
 0x1ba   : > { %3195 = vmatpush1.bf16.msra.mxu0 %v5126_v37  ;;  %v5194_v37 = vld [vmem:[%s6844_s3 + $0x590] ss:$12 sps:$4 sm:$0xff]  }
 0x1bb   : > { %3196 = vmatprep.subr.bf16.mxu0 %v5133_v40  ;;  %v5195_v40 = vld [vmem:[%s6844_s3 + $0x4d0] ss:$12 sps:$4 sm:$0xff]  }
 0x1bc   : > { %4589 = vmatpush3.bf16.msra.mxu1 %v5135_v45  ;;  %v5200_v45 = vld [vmem:[%s6844_s3 + $0x4e8] ss:$12 sps:$4 sm:$0xff]  }
 0x1bd   : > { %4596 = vmatprep.subr.bf16.mxu1 %v5139_v48  ;;  %v5201_v48 = vld [vmem:[%s6844_s3 + $0x5b8] ss:$12 sps:$4 sm:$0xff]  }
 0x1be   : > { %3197 = vmatpush1.bf16.msra.mxu0 %v5131_v44  ;;  %v5196_v44 = vld [vmem:[%s6844_s3 + $0x5a0] ss:$12 sps:$4 sm:$0xff]  }
 0x1bf   : > { %3207 = vmatprep.subr.bf16.mxu0 %v5138_v47  ;;  %3362 = vmatmul.mubr.bf16.vlgmr.msra.gmra.mrb[8].mxu1 %v6022_v33  ;;  %v5149_v33 = vld [vmem:[%s6844_s3 + $0x3f8] ss:$12 sps:$4 sm:$0xff]   ;;  %v5204_v47 = vld [vmem:[%s6844_s3 + $0x5c0] ss:$12 sps:$4 sm:$0xff]  }
 0x1c0   : > { %4597 = vmatpush3.bf16.msra.mxu1 %v5140_v51  ;;  %3401 = vmatprep.mubr.bf16.mxu1 %v6039_v38  ;;  %v5150_v38 = vld [vmem:[%s6844_s3 + $0x338] ss:$12 sps:$4 sm:$0xff]   ;;  %v5206_v51 = vld [vmem:[%s6844_s3 + $0x5d0] ss:$12 sps:$4 sm:$0xff]  }
 0x1c1   : > { %3199 = vmatmul.mubr.bf16.vlgmr.msra.gmra.mrb[0].mxu0 %v6234_v50  ;;  %4598 = vmatprep.subr.bf16.mxu1 %v5144_v54  ;;  %v1433_v54 = vsub.s32 6, %v5768_v24  ;;  %v5294_v24 = vld [vmem:[%s6846_s5 + $0x78] sm:$0xff]  }
 0x1c2   : > { %3208 = vmatpush1.bf16.msra.mxu0 %v5136_v1  ;;  %3239 = vmatprep.mubr.bf16.mxu0 %v6239_v52  ;;  %v5208_v1 = vld [vmem:[%s6844_s3 + $0x5d4] ss:$12 sps:$4 sm:$0xff]  }
 0x1c3   : > { %3209 = vmatprep.subr.bf16.mxu0 %v5143_v53  ;;  %v5213_v53 = vld [vmem:[%s6844_s3 + $0x5ec] ss:$12 sps:$4 sm:$0xff]  }
 0x1c4   : > { %4599 = vmatpush3.bf16.msra.mxu1 %v5145_v56  ;;  %v5211_v56 = vld [vmem:[%s6844_s3 + $0x5e8] ss:$12 sps:$4 sm:$0xff]  }
 0x1c5   : > { %4600 = vmatprep.subr.bf16.mxu1 %v5149_v33  ;;  %v1434_v33 = vrot.slane %v6002_v20, %v1433_v54  ;;  %v5220_v20 = vld [vmem:[%s6844_s3 + $0x608] ss:$12 sps:$4 sm:$0xff]  }
 0x1c6   : > { %3210 = vmatpush1.bf16.msra.mxu0 %v5141_v55  ;;  %v5214_v55 = vld [vmem:[%s6844_s3 + $0x5f0] ss:$12 sps:$4 sm:$0xff]  }
 0x1c7   : > { %3211 = vmatprep.subr.bf16.mxu0 %v5148_v57  ;;  %v5215_v57 = vld [vmem:[%s6844_s3 + $0x530] ss:$12 sps:$4 sm:$0xff]  }
 0x1c8   : > { %4601 = vmatpush3.bf16.msra.mxu1 %v5150_v38  ;;  %v5219_v38 = vld [vmem:[%s6844_s3 + $0x6c8] ss:$12 sps:$4 sm:$0xff]  }
 0x1c9   : > { %4602 = vmatprep.subr.bf16.mxu1 %v5154_v60  ;;  %v5216_v60 = vld [vmem:[%s6844_s3 + $0x600] ss:$12 sps:$4 sm:$0xff]  }
 0x1ca   : > { %3212 = vmatpush1.bf16.msra.mxu0 %v5146_v58  ;;  %v5218_v58 = vld [vmem:[%s6844_s3 + $0x604] ss:$12 sps:$4 sm:$0xff]  }
 0x1cb   : > { %3213 = vmatprep.subr.bf16.mxu0 %v5153_v59  ;;  %v1446_v59 = vrot.slane %v6051_v43, %v5997_v4 }
 0x1cc   : > { %4603 = vmatpush3.bf16.msra.mxu1 %v5155_v62  ;;  %v5223_v62 = vld [vmem:[%s6844_s3 + $0x61c] ss:$12 sps:$4 sm:$0xff]  }
 0x1cd   : > { %4604 = vmatprep.subr.bf16.mxu1 %v5159_v0  ;;  %v5224_v0 = vld [vmem:[%s6844_s3 + $0x6e0] ss:$12 sps:$4 sm:$0xff]  }
 0x1ce   : > { %3214 = vmatpush1.bf16.msra.mxu0 %v5151_v61  ;;  %v1463_v61 = vpack.c.bf16 %v1434_v33, %v1434_v33 }
 0x1cf   : > { %3215 = vmatprep.subr.bf16.mxu0 %v5158_v63  ;;  %v1466_v63 = vpack.c.bf16 %v1446_v59, %v1446_v59 }
 0x1d0   : > { %4605 = vmatpush3.bf16.msra.mxu1 %v5160_v3  ;;  %v5225_v3 = vld [vmem:[%s6844_s3 + $0x620] ss:$12 sps:$4 sm:$0xff]  }
 0x1d1   : > { %4606 = vmatprep.subr.bf16.mxu1 %v5164_v6  ;;  %v5229_v6 = vld [vmem:[%s6844_s3 + $0x6f8] ss:$12 sps:$4 sm:$0xff]  }
 0x1d2   : > { %3216 = vmatpush1.bf16.msra.mxu0 %v5156_v2  ;;  %v5221_v2 = vld [vmem:[%s6844_s3 + $0x618] ss:$12 sps:$4 sm:$0xff]  }
 0x1d3   : > { %3217 = vmatprep.subr.bf16.mxu0 %v5163_v5  ;;  %v5228_v5 = vld [vmem:[%s6844_s3 + $0x634] ss:$12 sps:$4 sm:$0xff]  }
 0x1d4   : > { %4607 = vmatpush3.bf16.msra.mxu1 %v5165_v8  ;;  %v5230_v8 = vld [vmem:[%s6844_s3 + $0x638] ss:$12 sps:$4 sm:$0xff]  }
 0x1d5   : > { %4608 = vmatprep.subr.bf16.mxu1 %v5169_v10  ;;  %v5234_v10 = vld [vmem:[%s6844_s3 + $0x710] ss:$12 sps:$4 sm:$0xff]  }
 0x1d6   : > { %3218 = vmatpush1.bf16.msra.mxu0 %v5161_v7  ;;  %v5226_v7 = vld [vmem:[%s6844_s3 + $0x630] ss:$12 sps:$4 sm:$0xff]  }
 0x1d7   : > { %3219 = vmatprep.subr.bf16.mxu0 %v5168_v9  ;;  %v5233_v9 = vld [vmem:[%s6844_s3 + $0x64c] ss:$12 sps:$4 sm:$0xff]  }
 0x1d8   : > { %4609 = vmatpush3.bf16.msra.mxu1 %v5170_v13  ;;  %v5235_v13 = vld [vmem:[%s6844_s3 + $0x650] ss:$12 sps:$4 sm:$0xff]  }
 0x1d9   : > { %4610 = vmatprep.subr.bf16.mxu1 %v5174_v15  ;;  %v5239_v15 = vld [vmem:[%s6844_s3 + $0x728] ss:$12 sps:$4 sm:$0xff]  }
 0x1da   : > { %3220 = vmatpush1.bf16.msra.mxu0 %v5166_v11  ;;  %v5231_v11 = vld [vmem:[%s6844_s3 + $0x648] ss:$12 sps:$4 sm:$0xff]  }
 0x1db   : > { %3221 = vmatprep.subr.bf16.mxu0 %v5173_v14  ;;  %v5238_v14 = vld [vmem:[%s6844_s3 + $0x664] ss:$12 sps:$4 sm:$0xff]  }
 0x1dc   : > { %4611 = vmatpush3.bf16.msra.mxu1 %v5175_v18  ;;  %v5240_v18 = vld [vmem:[%s6844_s3 + $0x668] ss:$12 sps:$4 sm:$0xff]  }
 0x1dd   : > { %4618 = vmatprep.subr.bf16.mxu1 %v5179_v21  ;;  %v5244_v21 = vld [vmem:[%s6844_s3 + $0x740] ss:$12 sps:$4 sm:$0xff]  }
 0x1de   : > { %3222 = vmatpush1.bf16.msra.mxu0 %v5171_v16  ;;  %v5236_v16 = vld [vmem:[%s6844_s3 + $0x660] ss:$12 sps:$4 sm:$0xff]  }
 0x1df   : > { %3223 = vmatprep.subr.bf16.mxu0 %v5178_v19  ;;  %3402 = vmatmul.mubr.bf16.vlgmr.msra.gmra.mrb[12].mxu1 %v6234_v50  ;;  %v5209_v50 = vld [vmem:[%s6844_s3 + $0x5d8] ss:$12 sps:$4 sm:$0xff]   ;;  %v5243_v19 = vld [vmem:[%s6844_s3 + $0x67c] ss:$12 sps:$4 sm:$0xff]  }
 0x1e0   : > { %4619 = vmatpush3.bf16.msra.mxu1 %v5180_v25  ;;  %3441 = vmatprep.mubr.bf16.mxu1 %v6239_v52  ;;  %v5210_v52 = vld [vmem:[%s6844_s3 + $0x518] ss:$12 sps:$4 sm:$0xff]   ;;  %v5245_v25 = vld [vmem:[%s6844_s3 + $0x680] ss:$12 sps:$4 sm:$0xff]  }
 0x1e1   : > { %4620 = vmatprep.subr.bf16.mxu1 %v5184_v28  ;;  %v5249_v28 = vld [vmem:[%s6844_s3 + $0x758] ss:$12 sps:$4 sm:$0xff]  }
 0x1e2   : > { %3224 = vmatpush1.bf16.msra.mxu0 %v5176_v23  ;;  %v5241_v23 = vld [vmem:[%s6844_s3 + $0x678] ss:$12 sps:$4 sm:$0xff]  }
 0x1e3   : > { %3225 = vmatprep.subr.bf16.mxu0 %v5183_v26  ;;  %v5248_v26 = vld [vmem:[%s6844_s3 + $0x694] ss:$12 sps:$4 sm:$0xff]  }
 0x1e4   : > { %4621 = vmatpush3.bf16.msra.mxu1 %v5185_v30  ;;  %v5250_v30 = vld [vmem:[%s6844_s3 + $0x698] ss:$12 sps:$4 sm:$0xff]  }
 0x1e5   : > { %4622 = vmatprep.subr.bf16.mxu1 %v5189_v32  ;;  %v5254_v32 = vld [vmem:[%s6844_s3 + $0x770] ss:$12 sps:$4 sm:$0xff]  }
 0x1e6   : > { %3226 = vmatpush1.bf16.msra.mxu0 %v5181_v29  ;;  %v5246_v29 = vld [vmem:[%s6844_s3 + $0x690] ss:$12 sps:$4 sm:$0xff]  }
 0x1e7   : > { %3227 = vmatprep.subr.bf16.mxu0 %v5188_v31  ;;  %v5253_v31 = vld [vmem:[%s6844_s3 + $0x6ac] ss:$12 sps:$4 sm:$0xff]  }
 0x1e8   : > { %4623 = vmatpush3.bf16.msra.mxu1 %v5190_v35  ;;  %v5255_v35 = vld [vmem:[%s6844_s3 + $0x6b0] ss:$12 sps:$4 sm:$0xff]  }
 0x1e9   : > { %4624 = vmatprep.subr.bf16.mxu1 %v5194_v37  ;;  %v1442_v37 = vrot.slane %v6051_v43, %v5993_v12  ;;  %v5264_v43 = vld [vmem:[%s6844_s3 + $0x6f4] ss:$12 sps:$4 sm:$0xff]  }
 0x1ea   : > { %3228 = vmatpush1.bf16.msra.mxu0 %v5186_v34  ;;  %v5251_v34 = vld [vmem:[%s6844_s3 + $0x6a8] ss:$12 sps:$4 sm:$0xff]  }
 0x1eb   : > { %3229 = vmatprep.subr.bf16.mxu0 %v5193_v36  ;;  %v5258_v36 = vld [vmem:[%s6844_s3 + $0x6c4] ss:$12 sps:$4 sm:$0xff]  }
 0x1ec   : > { %4625 = vmatpush3.bf16.msra.mxu1 %v5195_v40  ;;  %v5261_v40 = vld [vmem:[%s6844_s3 + $0x6dc] ss:$12 sps:$4 sm:$0xff]  }
 0x1ed   : > { %4626 = vmatprep.subr.bf16.mxu1 %v5199_v42  ;;  %v5259_v42 = vld [vmem:[%s6844_s3 + $0x6d8] ss:$12 sps:$4 sm:$0xff]  }
 0x1ee   : > { %3230 = vmatpush1.bf16.msra.mxu0 %v5191_v39  ;;  %v5256_v39 = vld [vmem:[%s6844_s3 + $0x6c0] ss:$12 sps:$4 sm:$0xff]  }
 0x1ef   : > { %3231 = vmatprep.subr.bf16.mxu0 %v5198_v41  ;;  %v1465_v41 = vpack.c.bf16 %v1442_v37, %v1442_v37 }
 0x1f0   : > { %4627 = vmatpush3.bf16.msra.mxu1 %v5200_v45  ;;  %v5267_v45 = vld [vmem:[%s6844_s3 + $0x70c] ss:$12 sps:$4 sm:$0xff]  }
 0x1f1   : > { %4628 = vmatprep.subr.bf16.mxu1 %v5204_v47  ;;  %v5270_v47 = vld [vmem:[%s6844_s3 + $0x724] ss:$12 sps:$4 sm:$0xff]  }
 0x1f2   : > { %3232 = vmatpush1.bf16.msra.mxu0 %v5196_v44  ;;  %v5262_v44 = vld [vmem:[%s6844_s3 + $0x6f0] ss:$12 sps:$4 sm:$0xff]  }
 0x1f3   : > { %3233 = vmatprep.subr.bf16.mxu0 %v5203_v46  ;;  %v5265_v46 = vld [vmem:[%s6844_s3 + $0x708] ss:$12 sps:$4 sm:$0xff]  }
 0x1f4   : > { %4629 = vmatpush3.bf16.msra.mxu1 %v5205_v49  ;;  %v5273_v49 = vld [vmem:[%s6844_s3 + $0x73c] ss:$12 sps:$4 sm:$0xff]  }
 0x1f5   : > { %4630 = vmatprep.subr.bf16.mxu1 %v5209_v50  ;;  %v5276_v50 = vld [vmem:[%s6844_s3 + $0x754] ss:$12 sps:$4 sm:$0xff]  }
 0x1f6   : > { %3234 = vmatpush1.bf16.msra.mxu0 %v5201_v48  ;;  %v5268_v48 = vld [vmem:[%s6844_s3 + $0x720] ss:$12 sps:$4 sm:$0xff]  }
 0x1f7   : > { %3235 = vmatprep.subr.bf16.mxu0 %v5208_v1  ;;  %v5271_v1 = vld [vmem:[%s6844_s3 + $0x738] ss:$12 sps:$4 sm:$0xff]  }
 0x1f8   : > { %4631 = vmatpush3.bf16.msra.mxu1 %v5210_v52  ;;  %v5279_v52 = vld [vmem:[%s6844_s3 + $0x76c] ss:$12 sps:$4 sm:$0xff]  }
 0x1f9   : > { %4632 = vmatprep.subr.bf16.mxu1 %v5214_v55 }
 0x1fa   : > { %3236 = vmatpush1.bf16.msra.mxu0 %v5206_v51  ;;  %v5274_v51 = vld [vmem:[%s6844_s3 + $0x750] ss:$12 sps:$4 sm:$0xff]  }
 0x1fb   : > { %3237 = vmatprep.subr.bf16.mxu0 %v5213_v53  ;;  %v5277_v53 = vld [vmem:[%s6844_s3 + $0x768] ss:$12 sps:$4 sm:$0xff]  }
 0x1fc   : > { %4633 = vmatpush3.bf16.msra.mxu1 %v5215_v57 }
 0x1fd   : > { %4640 = vmatprep.subr.bf16.mxu1 %v5219_v38 }
 0x1fe   : > { %3238 = vmatpush1.bf16.msra.mxu0 %v5211_v56 }
 0x1ff   : > { %3248 = vmatprep.subr.bf16.mxu0 %v5218_v58  ;;  %3442 = vmatmul.mubr.bf16.vlgmr.msra.gmra.mrb[16].mxu1 %v1463_v61 }
 0x200   : > { %4641 = vmatpush3.bf16.msra.mxu1 %v5220_v20  ;;  %3481 = vmatprep.mubr.bf16.mxu1 %v1466_v63  ;;  %v5281_v20 = vld [vmem:[%s6846_s5] sm:$0xff]  }
 0x201   : > { %3240 = vmatmul.mubr.bf16.vlgmr.msra.gmra.mrb[0].mxu0 %v1463_v61  ;;  %4642 = vmatprep.subr.bf16.mxu1 %v5224_v0  ;;  %v5280_v61 = vld [vmem:[%s6846_s5 + $0x40] sm:$0xff]   ;;  %v5284_v0 = vld [vmem:[%s6846_s5 + $0x50] sm:$0xff]  }
 0x202   : > { %3249 = vmatpush1.bf16.msra.mxu0 %v5216_v60  ;;  %3280 = vmatprep.mubr.bf16.mxu0 %v1466_v63  ;;  %v5283_v63 = vld [vmem:[%s6846_s5 + $0x8] sm:$0xff]  }
 0x203   : > { %3250 = vmatprep.subr.bf16.mxu0 %v5223_v62  ;;  %v5282_v62 = vld [vmem:[%s6846_s5 + $0x48] sm:$0xff]  }
 0x204   : > { %4643 = vmatpush3.bf16.msra.mxu1 %v5225_v3  ;;  %v5286_v3 = vld [vmem:[%s6846_s5 + $0x58] sm:$0xff]  }
 0x205   : > { %4644 = vmatprep.subr.bf16.mxu1 %v5229_v6  ;;  %v5288_v6 = vld [vmem:[%s6846_s5 + $0x60] sm:$0xff]  }
 0x206   : > { %3251 = vmatpush1.bf16.msra.mxu0 %v5221_v2  ;;  %v5285_v2 = vld [vmem:[%s6846_s5 + $0x10] sm:$0xff]  }
 0x207   : > { %3252 = vmatprep.subr.bf16.mxu0 %v5228_v5  ;;  %v5287_v5 = vld [vmem:[%s6846_s5 + $0x18] sm:$0xff]  }
 0x208   : > { %4645 = vmatpush3.bf16.msra.mxu1 %v5230_v8  ;;  %v5290_v8 = vld [vmem:[%s6846_s5 + $0x68] sm:$0xff]  }
 0x209   : > { %4646 = vmatprep.subr.bf16.mxu1 %v5234_v10  ;;  %v1787_v10 = vld [vmem:[%s6845_s4] sm:$0x7] }
 0x20a   : > { %3253 = vmatpush1.bf16.msra.mxu0 %v5226_v7  ;;  %v5289_v7 = vld [vmem:[%s6846_s5 + $0x20] sm:$0xff]  }
 0x20b   : > { %3254 = vmatprep.subr.bf16.mxu0 %v5233_v9  ;;  %v5291_v9 = vld [vmem:[%s6846_s5 + $0x28] sm:$0xff]  }
 0x20c   : > { %4647 = vmatpush3.bf16.msra.mxu1 %v5235_v13 }
 0x20d   : > { %4648 = vmatprep.subr.bf16.mxu1 %v5239_v15 }
 0x20e   : > { %3255 = vmatpush1.bf16.msra.mxu0 %v5231_v11  ;;  %v3080_v11 = vrot.slane %v1787_v10, %v1417_v17  ;;  %v5295_v17 = vld [vmem:[%s6846_s5 + $0x38] sm:$0xff]  }
 0x20f   : > { %3256 = vmatprep.subr.bf16.mxu0 %v5238_v14 }
 0x210   : > { %4649 = vmatpush3.bf16.msra.mxu1 %v5240_v18 }
 0x211   : > { %4650 = vmatprep.subr.bf16.mxu1 %v5244_v21 }
 0x212   : > { %3257 = vmatpush1.bf16.msra.mxu0 %v5236_v16 }
 0x213   : > { %3258 = vmatprep.subr.bf16.mxu0 %v5243_v19 }
 0x214   : > { %4651 = vmatpush3.bf16.msra.mxu1 %v5245_v25  ;;  %v5293_v25 = vld [vmem:[%s6846_s5 + $0x30] sm:$0xff]  }
 0x215   : > { %4652 = vmatprep.subr.bf16.mxu1 %v5249_v28 }
 0x216   : > { %3259 = vmatpush1.bf16.msra.mxu0 %v5241_v23  ;;  %v5292_v23 = vld [vmem:[%s6846_s5 + $0x70] sm:$0xff]  }
 0x217   : > { %3260 = vmatprep.subr.bf16.mxu0 %v5248_v26  ;;  %v5469_v26 = vmov 0.0  }
 0x218   : > { %4653 = vmatpush3.bf16.msra.mxu1 %v5250_v30 }
 0x219   : > { %4654 = vmatprep.subr.bf16.mxu1 %v5254_v32 }
 0x21a   : > { %3261 = vmatpush1.bf16.msra.mxu0 %v5246_v29 }
 0x21b   : > { %3262 = vmatprep.subr.bf16.mxu0 %v5253_v31 }
 0x21c   : > { %4655 = vmatpush3.bf16.msra.mxu1 %v5255_v35 }
 0x21d   : > { %4662 = vmatprep.subr.bf16.mxu1 %v5280_v61 }
 0x21e   : > { %3263 = vmatpush1.bf16.msra.mxu0 %v5251_v34 }
 0x21f   : > { %3264 = vmatprep.subr.bf16.mxu0 %v5258_v36  ;;  %3482 = vmatmul.mubr.bf16.vlgmr.msra.gmra.mrb[20].mxu1 %v1465_v41 }
 0x220   : > { %4663 = vmatpush3.bf16.msra.mxu1 %v5281_v20 }
 0x221   : > { %4664 = vmatprep.subr.bf16.mxu1 %v5282_v62  ;;  %v5297_v62 = vld [vmem:[%s6846_s5 + $0x88] sm:$0xff]  }
 0x222   : > { %3265 = vmatpush1.bf16.msra.mxu0 %v5256_v39 }
 0x223   : > { %3266 = vmatprep.subr.bf16.mxu0 %v5261_v40 }
 0x224   : > { %4665 = vmatpush3.bf16.msra.mxu1 %v5283_v63 }
 0x225   : > { %4666 = vmatprep.subr.bf16.mxu1 %v5284_v0  ;;  %v5298_v0 = vld [vmem:[%s6846_s5 + $0x90] sm:$0xff]  }
 0x226   : > { %3267 = vmatpush1.bf16.msra.mxu0 %v5259_v42 }
 0x227   : > { %3268 = vmatprep.subr.bf16.mxu0 %v5264_v43 }
 0x228   : > { %4667 = vmatpush3.bf16.msra.mxu1 %v5285_v2  ;;  %v5299_v2 = vld [vmem:[%s6846_s5 + $0x98] sm:$0xff]  }
 0x229   : > { %4668 = vmatprep.subr.bf16.mxu1 %v5286_v3  ;;  %v5301_v3 = vld [vmem:[%s6848_s7 + $0x8] sm:$0xff]  }
 0x22a   : > { %3269 = vmatpush1.bf16.msra.mxu0 %v5262_v44 }
 0x22b   : > { %3270 = vmatprep.subr.bf16.mxu0 %v5267_v45 }
 0x22c   : > { %4669 = vmatpush3.bf16.msra.mxu1 %v5287_v5  ;;  %v5302_v5 = vld [vmem:[%s6848_s7 + $0x10] sm:$0xff]  }
 0x22d   : > { %4670 = vmatprep.subr.bf16.mxu1 %v5288_v6  ;;  %v5303_v6 = vld [vmem:[%s6848_s7 + $0x18] sm:$0xff]  }
 0x22e   : > { %3271 = vmatpush1.bf16.msra.mxu0 %v5265_v46 }
 0x22f   : > { %3272 = vmatprep.subr.bf16.mxu0 %v5270_v47 }
 0x230   : > { %4671 = vmatpush3.bf16.msra.mxu1 %v5289_v7  ;;  %v5304_v7 = vld [vmem:[%s6848_s7 + $0x20] sm:$0xff]  }
 0x231   : > { %4672 = vmatprep.subr.bf16.mxu1 %v5290_v8  ;;  %v5305_v8 = vld [vmem:[%s6898_s10] sm:$0xff]  }
 0x232   : > { %3273 = vmatpush1.bf16.msra.mxu0 %v5268_v48  ;;  %v3072_v48 = vrot.slane %v1787_v10, %v5993_v12  ;;  %v5296_v12 = vld [vmem:[%s6846_s5 + $0x80] sm:$0xff]  }
 0x233   : > { %3274 = vmatprep.subr.bf16.mxu0 %v5273_v49  ;;  %v3076_v49 = vrot.slane %v1787_v10, %v5997_v4 }
 0x234   : > { %4673 = vmatpush3.bf16.msra.mxu1 %v5291_v9 }
 0x235   : > { %4674 = vmatprep.subr.bf16.mxu1 %v5292_v23 }
 0x236   : > { %3275 = vmatpush1.bf16.msra.mxu0 %v5271_v1 }
 0x237   : > { %3276 = vmatprep.subr.bf16.mxu0 %v5276_v50 }
 0x238   : > { %4675 = vmatpush3.bf16.msra.mxu1 %v5293_v25 }
 0x239   : > { %4676 = vmatprep.subr.bf16.mxu1 %v5294_v24 }
 0x23a   : > { %3277 = vmatpush1.bf16.msra.mxu0 %v5274_v51 }
 0x23b   : > { %3278 = vmatprep.subr.bf16.mxu0 %v5279_v52 }
 0x23c   : > { %4677 = vmatpush3.bf16.msra.mxu1 %v5295_v17 }
 0x23d   : > { %4698 = vmatprep.subr.bf16.mxu1 %v5469_v26 }
 0x23e   : > { %3279 = vmatpush1.bf16.msra.mxu0 %v5277_v53 }
 0x23f   : > { %4710 = vmatprep.subr.bf16.mxu0 %v5469_v26 }
 0x241   : > { %3281 = vmatmul.mubr.bf16.vlgmr.msra.gmra.mrb[0].mxu0 %v1465_v41 }
 0x242   : > { %4720 = vmatprep.mubr.msk.bf16.mxu0 %vm5470_vm2, %v5469_v26 }
 0x252   : > { %v6577_v54 = vpop.f32.mrb[0].mxu1 }
 0x253   : > { %v6579_v55 = vpop.f32.mrb[1].mxu1  ;;  %v3119_v1 = vadd.f32 %v6577_v54, %v3072_v48 }
 0x254   : > { %v3122_v56 = vpop.f32.mrb[2].mxu1  ;;  %v3121_v50 = vadd.f32 %v6579_v55, %v3076_v49 }
 0x255   : > { %v3123_v57 = vpop.f32.mrb[3].mxu1 }
 0x272   : > { %v4568_v33 = vpop.f32.mrb[4].mxu1 }
 0x273   : > { %v4569_v58 = vpop.f32.mrb[5].mxu1 }
 0x274   : > { %v4570_v38 = vadd.f32 %v4569_v58, %v4568_v33  ;;  %v4571_v59 = vpop.f32.mrb[6].mxu1 }
 0x275   : > { %v4572_v60 = vpop.f32.mrb[7].mxu1 }
 0x276   : > { %v3324_v15 = vadd.f32 %v4570_v38, %v3080_v11 }
 0x292   : > { %v4590_v13 = vpop.f32.mrb[8].mxu1 }
 0x293   : > { %v4591_v14 = vpop.f32.mrb[9].mxu1 }
 0x294   : > { %v4592_v16 = vadd.f32 %v4591_v14, %v4590_v13  ;;  %v4593_v18 = vpop.f32.mrb[10].mxu1 }
 0x295   : > { %v4594_v19 = vpop.f32.mrb[11].mxu1 }
 0x296   : > { %v3364_v21 = vadd.f32 %v4592_v16, %v3324_v15  ;;  %v3565_v15 = vld [vmem:[%s6899_s24] sm:$0x1] }
 0x2b2   : > { %v4612_v28 = vpop.f32.mrb[12].mxu1 }
 0x2b3   : > { %v4613_v29 = vpop.f32.mrb[13].mxu1 }
 0x2b4   : > { %v4614_v30 = vadd.f32 %v4613_v29, %v4612_v28  ;;  %v4615_v31 = vpop.f32.mrb[14].mxu1  ;;  %v3784_v29 = vld [vmem:[%s6900_s21] sm:$0x1] }
 0x2b5   : > { %v4616_v32 = vpop.f32.mrb[15].mxu1 }
 0x2b6   : > { %v3404_v34 = vadd.f32 %v4614_v30, %v3364_v21 }
 0x2d2   : > { %v4634_v35 = vpop.f32.mrb[16].mxu1 }
 0x2d3   : > { %v4635_v36 = vpop.f32.mrb[17].mxu1 }
 0x2d4   : > { %v4636_v37 = vadd.f32 %v4635_v36, %v4634_v35  ;;  %v4637_v39 = vpop.f32.mrb[18].mxu1 }
 0x2d5   : > { %v4638_v40 = vpop.f32.mrb[19].mxu1  ;;  %v3866_v39 = vld [vmem:[%s6901_s20] sm:$0x1] }
 0x2d6   : > { %v3444_v41 = vadd.f32 %v4636_v37, %v3404_v34 }
 0x2f2   : > { %v4656_v42 = vpop.f32.mrb[20].mxu1 }
 0x2f3   : > { %v4657_v43 = vpop.f32.mrb[21].mxu1 }
 0x2f4   : > { %v4658_v44 = vadd.f32 %v4657_v43, %v4656_v42  ;;  %v4659_v45 = vpop.f32.mrb[22].mxu1 }
 0x2f5   : > { %v4660_v46 = vpop.f32.mrb[23].mxu1 }
 0x2f6   : > { %v3484_v47 = vadd.f32 %v4658_v44, %v3444_v41 }
 0x2f8   : > { %v3491_v38 = vmax.f32 %v3484_v47, 0.0 }
 0x2fa   : > { %v3509_v54 = vrot.slane %v3491_v38, %v5771_v27  ;;  %v3524_v22 = vpack.c.bf16 %v3491_v38, %v3491_v38 }
 0x314   : > { %v3282_v51 = vpop.f32.mrb[0].mxu0 }
 0x315   : > { %v4733_v52 = vadd.f32 %v3282_v51, %v3119_v1  ;;  %v3284_v53 = vpop.f32.mrb[1].mxu0 }
 0x316   : > { %v4735_v56 = vadd.f32 %v3284_v53, %v3121_v50  ;;  %v3286_v57 = vpop.f32.mrb[2].mxu0 }
 0x317   : > { %v3489_v33 = vmax.f32 %v4733_v52, 0.0  ;;  %v3287_v58 = vpop.f32.mrb[3].mxu0 }
 0x318   : > { %v3490_v59 = vmax.f32 %v4735_v56, 0.0 }
 0x319   : > { %v3522_v4 = vpack.c.bf16 %v3489_v33, %v3489_v33 }
 0x31a   : > { %v3495_v60 = vcombine.low %v3489_v33, %v3490_v59  ;;  %v3523_v61 = vpack.c.bf16 %v3490_v59, %v3490_v59 }
 0x31c   : > { %v3502_v55 = vrot.slane %v3495_v60, %v5771_v27  ;;  %3722 = vmatprep.mubr.bf16.mxu1 %v3523_v61 }
 0x31d   : > { %3723 = vmatmul.mubr.bf16.vlgmr.msra.gmra.mrb[24].mxu1 %v3522_v4 }
 0x31e   : > { %v3510_v20 = vcombine.low %v3502_v55, %v3509_v54  ;;  %4699 = vmatpush3.bf16.msra.mxu1 %v5296_v12  ;;  %4706 = vmatprep.mubr.msk.bf16.mxu1 %vm5470_vm2, %v5469_v26 }
 0x31f   : > { %4700 = vmatprep.subr.bf16.mxu1 %v5469_v26 }
 0x320   : > { %v3517_v63 = vrot.slane %v3510_v20, %v5771_v27  ;;  %v5300_v27 = vld [vmem:[%s6848_s7] sm:$0xff]  }
 0x321   : > { %4711 = vmatpush3.bf16.msra.mxu0 %v5300_v27 }
 0x322   : > { %3521 = vst.msk [vmem:[%s5664_s19] sm:$0x7] %vm3519_vm3, %v3517_v63  ;;  %4701 = vmatpush3.bf16.msra.mxu1 %v5297_v62  ;;  %4712 = vmatprep.subr.bf16.mxu0 %v5469_v26 }
 0x323   : > { %4702 = vmatprep.subr.bf16.mxu1 %v5469_v26 }
 0x325   : > { %4713 = vmatpush3.bf16.msra.mxu0 %v5301_v3 }
 0x326   : > { %4703 = vmatpush3.bf16.msra.mxu1 %v5298_v0  ;;  %4714 = vmatprep.subr.bf16.mxu0 %v5469_v26 }
 0x327   : > { %4704 = vmatprep.subr.bf16.mxu1 %v5469_v26 }
 0x329   : > { %4715 = vmatpush3.bf16.msra.mxu0 %v5302_v5 }
 0x32a   : > { %4705 = vmatpush3.bf16.msra.mxu1 %v5299_v2  ;;  %4716 = vmatprep.subr.bf16.mxu0 %v5469_v26 }
 0x32b   : > { %4724 = vmatprep.subr.bf16.mxu1 %v5469_v26 }
 0x32d   : > { %4707 = vmatmul.mubr.msk.bf16.vlgmr.msra.gmra.mrb[28].mxu1 %vm3686_vm4, %v3524_v22  ;;  %4717 = vmatpush3.bf16.msra.mxu0 %v5303_v6 }
 0x32e   : > { %4728 = vmatprep.mubr.msk.bf16.mxu1 %vm5470_vm2, %v5469_v26  ;;  %4718 = vmatprep.subr.bf16.mxu0 %v5469_v26 }
 0x32f   : > { %4725 = vmatpush3.bf16.msra.mxu1 %v5305_v8 }
 0x330   : > { %4726 = vmatprep.subr.bf16.mxu1 %v5469_v26  ;;  %v5306_v26 = vld [vmem:[%s6898_s10 + $0x8] ss:$0 sps:$4 sm:$0x33]  }
 0x331   : > { %4719 = vmatpush3.bf16.msra.mxu0 %v5304_v7  ;;  %v3882_v28 = vsel %vm3880_vm7, %v5306_v26, 0 }
 0x333   : > { %4727 = vmatpush3.bf16.msra.mxu1 %v3882_v28 }
 0x3f0   : > { %v4678_v9 = vpop.f32.mrb[24].mxu1 }
 0x3f1   : > { %v4679_v10 = vpop.f32.mrb[25].mxu1 }
 0x3f2   : > { %v4680_v11 = vadd.f32 %v4679_v10, %v4678_v9  ;;  %v4681_v13 = vpop.f32.mrb[26].mxu1 }
 0x3f3   : > { %v4682_v14 = vpop.f32.mrb[27].mxu1 }
 0x3f4   : > { %v3725_v16 = vadd.f32 %v4680_v11, %v3565_v15 }
 0x400   : > { %v3764_v18 = vpop.f32.mrb[28].mxu1 }
 0x401   : > { %v3765_v19 = vadd.f32 %v3764_v18, %v3725_v16  ;;  %v4708_v21 = vpop.f32.mrb[29].mxu1 }
 0x402   : > { %v3767_v23 = vpop.f32.mrb[30].mxu1 }
 0x403   : > { %v3770_v25 = vmax.f32 %v3765_v19, 0.0  ;;  %v4709_v24 = vpop.f32.mrb[31].mxu1 }
 0x405   : > { %3772 = vst.msk [vmem:[%s559_s26] sm:$0x1] %vm3771_vm5, %v3770_v25  ;;  %v3773_v17 = vpack.c.bf16 %v3770_v25, %v3770_v25 }
 0x407   : > { %4721 = vmatmul.mubr.msk.bf16.vlgmr.msra.gmra.mrb[4].mxu0 %vm3815_vm6, %v3773_v17 }
 0x4da   : > { %v3853_v30 = vpop.f32.mrb[4].mxu0 }
 0x4db   : > { %v3854_v31 = vadd.f32 %v3853_v30, %v3784_v29  ;;  %v4722_v32 = vpop.f32.mrb[5].mxu0 }
 0x4dc   : > { %v3856_v34 = vpop.f32.mrb[6].mxu0 }
 0x4dd   : > { %v3859_v35 = vmax.f32 %v3854_v31, 0.0  ;;  %v4723_v36 = vpop.f32.mrb[7].mxu0 }
 0x4df   : > { %3861 = vst.msk [vmem:[%s565_s22] sm:$0x1] %vm3860_vm8, %v3859_v35  ;;  %v3862_v37 = vpack.c.bf16 %v3859_v35, %v3859_v35 }
 0x4e1   : > { %4729 = vmatmul.mubr.msk.bf16.vlgmr.msra.gmra.mrb[32].mxu1 %vm3876_vm9, %v3862_v37 }
 0x5b4   : > { %v3918_v40 = vpop.f32.mrb[32].mxu1 }
 0x5b5   : > { %v3919_v41 = vadd.f32 %v3918_v40, %v3866_v39  ;;  %v4730_v42 = vpop.f32.mrb[33].mxu1 }
 0x5b6   : > { %v3921_v43 = vpop.f32.mrb[34].mxu1 }
 0x5b7   : > { %3925 = vst.msk [vmem:[%s571_s30] sm:$0x1] %vm3924_vm10, %v3919_v41  ;;  %v4731_v44 = vpop.f32.mrb[35].mxu1 }
 0x5b8 PF: > { %s6902_s16 = sld [smem:[#allocation16_spill]]  ;;  %s6904_s18 = sld [smem:[#allocation13_spill]] }
 0x5b9   : > { %s6906_s24 = sld [smem:[#allocation27_spill]]  ;;  %s3974_s19 = sshll.u32 %s565_s22, 4  ;;  %s6723_s19 = int_to_ptr.vmem [resolvable:$true] %s3974_s19 }
 0x5ba   : > { %s6908_s23 = sld [smem:[#allocation26_spill]] }
 0x5be   : > { %s6903_s29 = sadd.s32 4294967295, %s6902_s16   ;;  %s6713_s9 = sshll.u32 %s6904_s18, 4 }
 0x5bf   : > { %s6710_s8 = sand.u32 1, %s6903_s29   ;;  %s6907_s15 = smov %s6906_s24 }
 0x5c0   : > { %s6719_s25 = scalar_lea.hbm %s6906_s24, %s6713_s9  ;;  %s6909_s28 = smov %s6908_s23 }
 0x5c1   : > { %s6729_s20 = scalar_lea.hbm %s6908_s23, %s6713_s9  ;;  %s3939_s16 = scalar_lea.sflag [#allocation6], %s6710_s8 }
 0x5c2   : > { %s5309_s29 = scalar_lea.vmem %s6723_s19, 16  ;;  %s5471_s18 = smov [#allocation5]  }
 0x5c3   : > { %p5310_p4 = scmp.ne.s32.totalorder %s6723_s19, %s5309_s29  ;;  %s5313_s13 = sshll.u32 %s5471_s18, 4  ;;  %s5314_s13 = int_to_ptr.vmem [resolvable:$false] %s5313_s13 }
 0x5c4   : > { %s5315_s22 = scalar_lea.vmem %s5314_s13, 32  ;;  %p5316_p7 = scmp.lt.s32.totalorder %s6723_s19, %s5314_s13 }
 0x5c5   : > { %p5311_p5 = pnand %p5310_p4, %p5605_p3  ;;  %p5317_p8 = scmp.lt.s32.totalorder %s5315_s22, %s5309_s29 }
 0x5c7   : > { %p5312_p6 = pneg %p5311_p5  ;;  %p5318_p10 = por %p5317_p8, %p5316_p7 }
 0x5c9   : > { %p5319_p11 = pnand %p5318_p10, %p5312_p6 }
 0x5cb   : > { %5322 = shalt.err (!%p5319_p11)
}
 0x5cc   : > { %s5323_s14 = scalar_lea.hbm %s6719_s25, 16  ;;  %s5327_s21 = scalar_lea.hbm %s6907_s15, 32 }
 0x5cd   : > { %p5324_p12 = scmp.ne.s32.totalorder %s6719_s25, %s5323_s14  ;;  %p5328_p1 = scmp.lt.u32.totalorder %s6719_s25, %s6907_s15 }
 0x5ce   : > { %p5329_p2 = scmp.lt.u32.totalorder %s5327_s21, %s5323_s14  ;;  %p5331_p5 = scmp.lt.u32.totalorder %s5323_s14, %s6719_s25 }
 0x5cf   : > { %p5325_p13 = pnand %p5324_p12, %p5605_p3 }
 0x5d0   : > { %p5330_p4 = por %p5329_p2, %p5328_p1 }
 0x5d1   : > { %p5326_p0 = pneg %p5325_p13 }
 0x5d2   : > { %p5332_p6 = por %p5331_p5, %p5330_p4 }
 0x5d4   : > { %p5333_p7 = pnand %p5332_p6, %p5326_p0 }
 0x5d6   : > { %5336 = shalt.err (!%p5333_p7)
}
 0x5d7   : > { %4753 = dma.vmem_to_hbm [thread:$0]  (%p5605_p3), %s6723_s19, 16, %s6719_s25, %s3939_s16  }
 0x5d8   : > { %s3961_s29 = sshll.u32 %s559_s26, 4  ;;  %s6910_s14 = sld [smem:[#allocation28_spill]]  ;;  %s6763_s29 = int_to_ptr.vmem [resolvable:$true] %s3961_s29 }
 0x5d9   : > { %s6767_s17 = sshll.u32 %s571_s30, 4  ;;  %s3935_s21 = scalar_lea.sflag [#allocation4], %s5628_s27  ;;  %s3988_s17 = int_to_ptr.vmem [resolvable:$true] %s6767_s17 }
 0x5da   : > { %s5337_s23 = scalar_lea.vmem %s6763_s29, 16  ;;  %s5472_s26 = smov [#allocation3]  }
 0x5db   : > { %p5338_p8 = scmp.ne.s32.totalorder %s6763_s29, %s5337_s23  ;;  %s5341_s25 = sshll.u32 %s5472_s26, 4  ;;  %s5342_s25 = int_to_ptr.vmem [resolvable:$false] %s5341_s25 }
 0x5dc   : > { %s5343_s19 = scalar_lea.vmem %s5342_s25, 32  ;;  %p5344_p12 = scmp.lt.s32.totalorder %s6763_s29, %s5342_s25 }
 0x5dd   : > { %p5339_p10 = pnand %p5338_p8, %p5605_p3  ;;  %p5345_p13 = scmp.lt.s32.totalorder %s5343_s19, %s5337_s23 }
 0x5de   : > { %s6761_s24 = scalar_lea.hbm %s6910_s14, %s6713_s9 }
 0x5df   : > { %p5340_p11 = pneg %p5339_p10  ;;  %p5346_p0 = por %p5345_p13, %p5344_p12 }
 0x5e1   : > { %p5347_p1 = pnand %p5346_p0, %p5340_p11 }
 0x5e3   : > { %5350 = shalt.err (!%p5347_p1)
}
 0x5e4   : > { %s5351_s27 = scalar_lea.hbm %s6729_s20, 16  ;;  %s5355_s18 = scalar_lea.hbm %s6909_s28, 32 }
 0x5e5   : > { %p5352_p2 = scmp.ne.s32.totalorder %s6729_s20, %s5351_s27  ;;  %p5356_p6 = scmp.lt.u32.totalorder %s6729_s20, %s6909_s28 }
 0x5e6   : > { %p5357_p7 = scmp.lt.u32.totalorder %s5355_s18, %s5351_s27  ;;  %p5359_p10 = scmp.lt.u32.totalorder %s5351_s27, %s6729_s20 }
 0x5e7   : > { %p5353_p4 = pnand %p5352_p2, %p5605_p3 }
 0x5e8   : > { %p5358_p8 = por %p5357_p7, %p5356_p6 }
 0x5e9   : > { %p5354_p5 = pneg %p5353_p4 }
 0x5ea   : > { %p5360_p11 = por %p5359_p10, %p5358_p8 }
 0x5ec   : > { %p5361_p12 = pnand %p5360_p11, %p5354_p5 }
 0x5ee   : > { %5364 = shalt.err (!%p5361_p12)
}
 0x5ef   : > { %4752 = dma.vmem_to_hbm [thread:$0]  (%p5605_p3), %s6763_s29, 16, %s6729_s20, %s3935_s21  }
 0x5f0   : > { %s5365_s23 = scalar_lea.vmem %s3988_s17, 16  ;;  %s5473_s26 = smov [#allocation7]  }
 0x5f1   : > { %p5366_p13 = scmp.ne.s32.totalorder %s3988_s17, %s5365_s23  ;;  %s5369_s25 = sshll.u32 %s5473_s26, 4  ;;  %s5370_s25 = int_to_ptr.vmem [resolvable:$false] %s5369_s25 }
 0x5f2   : > { %s5371_s19 = scalar_lea.vmem %s5370_s25, 32  ;;  %p5372_p2 = scmp.lt.s32.totalorder %s3988_s17, %s5370_s25 }
 0x5f3   : > { %p5367_p0 = pnand %p5366_p13, %p5605_p3  ;;  %p5373_p4 = scmp.lt.s32.totalorder %s5371_s19, %s5365_s23 }
 0x5f5   : > { %p5368_p1 = pneg %p5367_p0  ;;  %p5374_p5 = por %p5373_p4, %p5372_p2 }
 0x5f7   : > { %p5375_p6 = pnand %p5374_p5, %p5368_p1 }
 0x5f9   : > { %5378 = shalt.err (!%p5375_p6)
}
 0x5fa   : > { %s5379_s20 = scalar_lea.hbm %s6761_s24, 16  ;;  %s5383_s27 = scalar_lea.hbm %s6910_s14, 32 }
 0x5fb   : > { %p5380_p7 = scmp.ne.s32.totalorder %s6761_s24, %s5379_s20  ;;  %p5384_p11 = scmp.lt.u32.totalorder %s6761_s24, %s6910_s14 }
 0x5fc   : > { %p5385_p12 = scmp.lt.u32.totalorder %s5383_s27, %s5379_s20  ;;  %p5387_p0 = scmp.lt.u32.totalorder %s5379_s20, %s6761_s24 }
 0x5fd   : > { %p5381_p8 = pnand %p5380_p7, %p5605_p3 }
 0x5fe   : > { %p5386_p13 = por %p5385_p12, %p5384_p11 }
 0x5ff   : > { %p5382_p10 = pneg %p5381_p8 }
 0x600   : > { %p5388_p1 = por %p5387_p0, %p5386_p13 }
 0x602   : > { %p5389_p2 = pnand %p5388_p1, %p5382_p10 }
 0x604   : > { %5392 = shalt.err (!%p5389_p2)
}
 0x605   : > { %4754 = dma.vmem_to_hbm [thread:$0]  (%p5605_p3), %s3988_s17, 16, %s6761_s24, %s3939_s16  }
 0x606 PF: > { %s6911_s18 = sld [smem:[#allocation16_spill]]  ;;  %s6912_s13 = sld [smem:[#allocation10_spill]] }
 0x60c   : > { %p4768_p4 = scmp.ge.s32.totalorder %s6911_s18, 2  ;;  %s4013_s23 = sand.u32 1, %s6912_s13  }
 0x60d   : > { %s4014_s26 = scalar_lea.sflag [#allocation4], %s4013_s23 }
 0x60e   : > { %p4759_p5 = pnand %p4768_p4, %p5617_p9 }
 0x610   : > { %5426 = dma.done.wait (!%p4759_p5), %s4014_s26, 16  }
 0x611   : > { %5428 = vsyncadd (!%p4759_p5), %s4014_s26, 4294967280  ;;  %s6914_s25 = sadd.s32 4294967294, %s6911_s18  }
 0x612   : > { %s4021_s19 = sand.u32 1, %s6914_s25  }
 0x613   : > { %s4022_s20 = scalar_lea.sflag [#allocation6], %s4021_s19 }
 0x614   : > { %5430 = dma.done.wait (!%p4759_p5), %s4022_s20, 32  }
 0x615   : > { %5432 = vsyncadd (!%p4759_p5), %s4022_s20, 4294967264  ;;  %s32_s25 = sadd.s32 1, %s6911_s18   ;;  %s6915_s18 = sld [smem:[#allocation11_spill]] }
 0x616   : > { %p29_p3 = scmp.ge.s32.totalorder %s32_s25, 6   ;;  %s6916_s19 = sld [smem:[#allocation12_spill]] }
 0x617   : > { %s6917_s20 = sld [smem:[#allocation21_spill]]  ;;  %s6918_s21 = sld [smem:[#allocation14_spill]] }
 0x618   : > { %s6919_s22 = sld [smem:[#allocation15_spill]]  ;;  %s6920_s23 = sld [smem:[#allocation17_spill]] }
 0x619   : > { %s6921_s24 = sld [smem:[#allocation19_spill]]  ;;  %31 = sbr.rel (!%p29_p3) target bundleno = 15 (0xf), region = 169 }
 0x620   :  { %4034 = vsyncpa [#allocation4], 1 }
 0x621   :  { %4036 = vsyncpa [#allocation4 + $0x1], 1 }
 0x622   :  { %4037 = vsyncpa [#allocation6], 1 }
 0x623   :  { %4039 = vsyncpa [#allocation6 + $0x1], 1 }

</bundles_post_ra>
